<compile_context>
chip_gen: v7x
topology: tpu7x:2x2x1
jax: 0.10.0
libtpu: 0.0.40
codegen_flags: <defaults>
</compile_context>

<pallas_src>
import functools

import jax
import jax.numpy as jnp
from jax.experimental import pallas as pl
from jax.experimental.pallas import tpu as pltpu


# ---------------------------------------------------------------------------
# in-kernel helpers (pure functions on values)
# ---------------------------------------------------------------------------

def _layernorm(x, gamma, beta, eps):
    """f32 LayerNorm over the last axis; gamma/beta are (1, E)."""
    mean = jnp.mean(x, axis=-1, keepdims=True)
    xc = x - mean
    var = jnp.mean(xc * xc, axis=-1, keepdims=True)
    return xc * jax.lax.rsqrt(var + eps) * gamma + beta


def _gelu(x):
    # TODO(synk): nn.GELU default is the exact erf form; the tanh approximation
    # is used here for guaranteed Mosaic lowering (max abs diff ~1e-3).
    return 0.5 * x * (1.0 + jnp.tanh(0.7978845608028654 *
                                     (x + 0.044715 * x * x * x)))


def _split_heads(x2d, num_head, head_dim):
    """(T, H*dh) -> (H, T, dh) via static lane slices (no minor-dim reshape)."""
    return jnp.stack(
        [x2d[:, h * head_dim:(h + 1) * head_dim] for h in range(num_head)],
        axis=0)


# ---------------------------------------------------------------------------
# patch embedding kernel: proj(patches) + bias + pos-embed, prepend cls token
# ---------------------------------------------------------------------------

def _embed_kernel(p_ref, w_ref, b_ref, pos_ref, cls_ref, o_ref):
    y = jnp.dot(p_ref[...].astype(jnp.bfloat16), w_ref[...],
                preferred_element_type=jnp.float32)
    # pos is added to patch tokens only (matches the reference: pos add happens
    # before the cls prepend).
    y = y + b_ref[...] + pos_ref[...]
    out = jnp.concatenate([cls_ref[...], y], axis=0)      # (T, E), token 0 = cls
    o_ref[...] = out.astype(o_ref.dtype)                  # single aligned store


def patch_embed(patches, w, b, pos, cls, *, out_dtype=jnp.bfloat16):
    B, Tp, Cpp = patches.shape
    E = w.shape[1]
    T = Tp + 1
    cost = pl.CostEstimate(
        flops=2 * B * Tp * Cpp * E,
        transcendentals=0,
        bytes_accessed=B * Tp * Cpp * 4 + Cpp * E * 2 + B * T * E * 2)
    return pl.pallas_call(
        _embed_kernel,
        out_shape=jax.ShapeDtypeStruct((B, T, E), out_dtype),
        grid=(B,),
        in_specs=[
            pl.BlockSpec((None, Tp, Cpp), lambda i: (i, 0, 0)),   # per-batch patches
            pl.BlockSpec((Cpp, E), lambda i: (0, 0)),             # patch proj weight
            pl.BlockSpec((1, E), lambda i: (0, 0)),               # bias
            pl.BlockSpec((Tp, E), lambda i: (0, 0)),              # pos embedding
            pl.BlockSpec((1, E), lambda i: (0, 0)),               # cls token
        ],
        out_specs=pl.BlockSpec((None, T, E), lambda i: (i, 0, 0)),
        compiler_params=pltpu.CompilerParams(
            dimension_semantics=("parallel",),
            # TODO(synk): raise per-generation once token tiling exists.
            vmem_limit_bytes=32 * 1024 * 1024),
        cost_estimate=cost,
    )(patches, w, b, pos, cls)


# ---------------------------------------------------------------------------
# fused transformer block kernel (pre-norm ViT block, optional fused final LN)
# ---------------------------------------------------------------------------

def _block_kernel(x_ref, ln1g_ref, ln1b_ref, wqkv_ref, bqkv_ref,
                  wproj_ref, bproj_ref, ln2g_ref, ln2b_ref,
                  wfc1_ref, bfc1_ref, wfc2_ref, bfc2_ref, *rest,
                  num_head, eps, fuse_final_ln):
    if fuse_final_ln:
        lnfg_ref, lnfb_ref, o_ref = rest
    else:
        (o_ref,) = rest

    x = x_ref[...].astype(jnp.float32)                     # (T, E) residual stream
    T, E = x.shape
    dh = E // num_head

    # ---- LN1 + fused QKV projection (1/sqrt(dh) pre-folded into W_q) -------
    h = _layernorm(x, ln1g_ref[...], ln1b_ref[...], eps)
    qkv = (jnp.dot(h.astype(jnp.bfloat16), wqkv_ref[...],
                   preferred_element_type=jnp.float32)
           + bqkv_ref[...]).astype(jnp.bfloat16)            # (T, 3E)

    # ---- head-batched attention: two MXU calls over a leading H batch dim --
    q = _split_heads(qkv[:, 0 * E:1 * E], num_head, dh)     # (H, T, dh)
    k = _split_heads(qkv[:, 1 * E:2 * E], num_head, dh)
    v = _split_heads(qkv[:, 2 * E:3 * E], num_head, dh)
    s = jax.lax.dot_general(q, k, (((2,), (2,)), ((0,), (0,))),
                            preferred_element_type=jnp.float32)   # (H, T, T)
    m = jnp.max(s, axis=-1, keepdims=True)
    e = jnp.exp(s - m)
    p = e / jnp.sum(e, axis=-1, keepdims=True)               # exact softmax
    o = jax.lax.dot_general(p.astype(jnp.bfloat16), v,
                            (((2,), (1,)), ((0,), (0,))),
                            preferred_element_type=jnp.float32)   # (H, T, dh)

    # ---- head-merge -> ONE (T,E)@(E,E) output projection + residual --------
    attn = jnp.concatenate([o[hd] for hd in range(num_head)],
                           axis=-1).astype(jnp.bfloat16)     # (T, E)
    acc = x + jnp.dot(attn, wproj_ref[...],
                      preferred_element_type=jnp.float32) + bproj_ref[...]

    # ---- LN2 + MLP (GELU) + residual, all kept in VMEM/vregs ----------------
    h2 = _layernorm(acc, ln2g_ref[...], ln2b_ref[...], eps)
    f1 = jnp.dot(h2.astype(jnp.bfloat16), wfc1_ref[...],
                 preferred_element_type=jnp.float32) + bfc1_ref[...]
    f1 = _gelu(f1)
    f2 = jnp.dot(f1.astype(jnp.bfloat16), wfc2_ref[...],
                 preferred_element_type=jnp.float32) + bfc2_ref[...]
    out = acc + f2

    if fuse_final_ln:                                        # encoder-final LN
        out = _layernorm(out, lnfg_ref[...], lnfb_ref[...], eps)
    o_ref[...] = out.astype(o_ref.dtype)


def transformer_block(x, blk, *, num_head, eps=1e-5, final_ln=None,
                      out_dtype=None):
    B, T, E = x.shape
    hidden = blk["fc1_w"].shape[1]
    out_dtype = out_dtype if out_dtype is not None else x.dtype
    fuse = final_ln is not None

    full2 = lambda i: (0, 0)
    in_specs = [
        pl.BlockSpec((None, T, E), lambda i: (i, 0, 0)),       # x (per-batch tile)
        pl.BlockSpec((1, E), full2), pl.BlockSpec((1, E), full2),          # ln1
        pl.BlockSpec((E, 3 * E), full2), pl.BlockSpec((1, 3 * E), full2),  # qkv
        pl.BlockSpec((E, E), full2), pl.BlockSpec((1, E), full2),          # proj
        pl.BlockSpec((1, E), full2), pl.BlockSpec((1, E), full2),          # ln2
        pl.BlockSpec((E, hidden), full2), pl.BlockSpec((1, hidden), full2),  # fc1
        pl.BlockSpec((hidden, E), full2), pl.BlockSpec((1, E), full2),       # fc2
    ]
    args = [x, blk["ln1_g"], blk["ln1_b"], blk["qkv_w"], blk["qkv_b"],
            blk["proj_w"], blk["proj_b"], blk["ln2_g"], blk["ln2_b"],
            blk["fc1_w"], blk["fc1_b"], blk["fc2_w"], blk["fc2_b"]]
    if fuse:
        in_specs += [pl.BlockSpec((1, E), full2), pl.BlockSpec((1, E), full2)]
        args += [final_ln[0], final_ln[1]]

    cost = pl.CostEstimate(
        flops=B * (2 * T * E * 3 * E + 4 * T * T * E + 2 * T * E * E
                   + 4 * T * E * hidden),
        transcendentals=B * (num_head * T * T + T * hidden),
        bytes_accessed=(2 * B * T * E * 2
                        + 2 * (3 * E * E + E * E + 2 * E * hidden)
                        + 4 * (9 * E + hidden)))

    # In/out tiles are identical blocks; alias when dtypes also match so XLA
    # can reuse the residual-stream HBM buffer across the layer loop.
    aliases = {0: 0} if out_dtype == x.dtype else {}

    return pl.pallas_call(
        functools.partial(_block_kernel, num_head=num_head, eps=eps,
                          fuse_final_ln=fuse),
        out_shape=jax.ShapeDtypeStruct((B, T, E), out_dtype),
        grid=(B,),
        in_specs=in_specs,
        out_specs=pl.BlockSpec((None, T, E), lambda i: (i, 0, 0)),
        input_output_aliases=aliases,
        compiler_params=pltpu.CompilerParams(
            dimension_semantics=("parallel",),
            # TODO(synk): v7x needs a re-derived budget (64 MiB VMEM) +
            # single-buffered weight specs once dims are real; v5e/v6e can go
            # higher with token tiling.
            vmem_limit_bytes=32 * 1024 * 1024),
        cost_estimate=cost,
    )(*args)


# ---------------------------------------------------------------------------
# standalone final layer norm (only used when num_layer == 0)
# ---------------------------------------------------------------------------

def _final_ln_kernel(x_ref, g_ref, b_ref, o_ref, *, eps):
    o_ref[...] = _layernorm(x_ref[...].astype(jnp.float32), g_ref[...],
                            b_ref[...], eps).astype(o_ref.dtype)


def final_layernorm(x, g, b, eps=1e-5):
    B, T, E = x.shape
    return pl.pallas_call(
        functools.partial(_final_ln_kernel, eps=eps),
        out_shape=jax.ShapeDtypeStruct((B, T, E), jnp.float32),
        grid=(B,),
        in_specs=[pl.BlockSpec((None, T, E), lambda i: (i, 0, 0)),
                  pl.BlockSpec((1, E), lambda i: (0, 0)),
                  pl.BlockSpec((1, E), lambda i: (0, 0))],
        out_specs=pl.BlockSpec((None, T, E), lambda i: (i, 0, 0)),
        compiler_params=pltpu.CompilerParams(
            dimension_semantics=("parallel",),
            vmem_limit_bytes=32 * 1024 * 1024),
    )(x, g, b)


# ---------------------------------------------------------------------------
# parameters (deterministic synthetic init; matmul weights stored bf16)
# ---------------------------------------------------------------------------

def init_params(key, in_channels, img_size, patch_size, emb_dim,
                num_layer, num_head, mlp_ratio=4):
    n_patches = (img_size // patch_size) ** 2
    cpp = in_channels * patch_size * patch_size
    hidden = emb_dim * mlp_ratio
    dh = emb_dim // num_head
    scale = float(dh) ** -0.5

    def nrm(k, shape, std=0.02):
        return std * jax.random.normal(k, shape, jnp.float32)

    keys = jax.random.split(key, 4 + num_layer)
    params = {
        "cls": nrm(keys[0], (1, emb_dim)),                          # (1, E)
        "pos": nrm(keys[1], (n_patches, emb_dim)),                  # (Tp, E)
        # conv weight pre-flattened: (C*p*p, E) so y = patches @ W + b
        "patch_w": nrm(keys[2], (cpp, emb_dim)).astype(jnp.bfloat16),
        "patch_b": jnp.zeros((1, emb_dim), jnp.float32),
        "lnf_g": jnp.ones((1, emb_dim), jnp.float32),
        "lnf_b": jnp.zeros((1, emb_dim), jnp.float32),
        "blocks": [],
    }
    for li in range(num_layer):
        bk = jax.random.split(keys[4 + li], 4)
        qkv_w = nrm(bk[0], (emb_dim, 3 * emb_dim))
        # Fold the 1/sqrt(dh) attention scale into the Q columns (one-time
        # parameter transform; qkv_b is zero so no bias fold needed).
        qkv_w = qkv_w.at[:, :emb_dim].multiply(scale)
        params["blocks"].append({
            "ln1_g": jnp.ones((1, emb_dim), jnp.float32),
            "ln1_b": jnp.zeros((1, emb_dim), jnp.float32),
            "qkv_w": qkv_w.astype(jnp.bfloat16),
            "qkv_b": jnp.zeros((1, 3 * emb_dim), jnp.float32),
            "proj_w": nrm(bk[1], (emb_dim, emb_dim)).astype(jnp.bfloat16),
            "proj_b": jnp.zeros((1, emb_dim), jnp.float32),
            "ln2_g": jnp.ones((1, emb_dim), jnp.float32),
            "ln2_b": jnp.zeros((1, emb_dim), jnp.float32),
            "fc1_w": nrm(bk[2], (emb_dim, hidden)).astype(jnp.bfloat16),
            "fc1_b": jnp.zeros((1, hidden), jnp.float32),
            "fc2_w": nrm(bk[3], (hidden, emb_dim)).astype(jnp.bfloat16),
            "fc2_b": jnp.zeros((1, emb_dim), jnp.float32),
        })
    return params


# ---------------------------------------------------------------------------
# forward pass
# ---------------------------------------------------------------------------

def vit_encoder_forward(img, params, *, patch_size, num_head):
    B, C, H, W = img.shape
    p = patch_size
    Hn, Wn = H // p, W // p
    Tp = Hn * Wn

    # patch extraction (kernel=stride=p conv as im2col); layout glue stays in
    # XLA, the projection + pos + cls prepend run in the Pallas embed kernel.
    patches = img.reshape(B, C, Hn, p, Wn, p)
    patches = patches.transpose(0, 2, 4, 1, 3, 5)          # (B, Hn, Wn, C, p, p)
    patches = patches.reshape(B, Tp, C * p * p)

    x = patch_embed(patches, params["patch_w"], params["patch_b"],
                    params["pos"], params["cls"])          # bf16 (B, T, E)

    blocks = params["blocks"]
    for li, blk in enumerate(blocks):
        last = li == len(blocks) - 1
        x = transformer_block(
            x, blk, num_head=num_head,
            final_ln=(params["lnf_g"], params["lnf_b"]) if last else None,
            out_dtype=jnp.float32 if last else jnp.bfloat16)

    if not blocks:                                         # num_layer == 0 fallback
        x = final_layernorm(x, params["lnf_g"], params["lnf_b"])

    # TODO(synk): at real dims emit the (T,B,E) layout straight from the last
    # block's out_spec instead of this (tiny) XLA transpose.
    return jnp.transpose(x, (1, 0, 2))                     # 'b t c -> t b c'


# ---------------------------------------------------------------------------
# main
# ---------------------------------------------------------------------------

if __name__ == "__main__":
    in_channels = 4
    img_size = 16
    patch_size = 8        # -> 2x2 = 4 patches, 5 tokens with cls
    emb_dim = 32
    num_layer = 2
    num_head = 4
    batch = 2

    key = jax.random.PRNGKey(0)
    k_img, k_par = jax.random.split(key)
    img = jax.random.normal(
        k_img, (batch, in_channels, img_size, img_size), jnp.float32)

    params = init_params(k_par, in_channels, img_size, patch_size,
                         emb_dim, num_layer, num_head)

    fwd = jax.jit(functools.partial(
        vit_encoder_forward, patch_size=patch_size, num_head=num_head))
    features = jax.block_until_ready(fwd(img, params))

    expected_T = (img_size // patch_size) ** 2 + 1
    assert features.shape == (expected_T, batch, emb_dim), features.shape
    assert features.dtype == jnp.float32, features.dtype
    assert bool(jnp.all(jnp.isfinite(features)))
    print("KERNEL_OK")
</pallas_src>

<mosaic_0001>
module attributes {stable_mosaic.version = 11 : i64} {
  func.func @_block_kernel(%arg0: i32, %arg1: memref<1x5x32xbf16, #tpu.memory_space<vmem>>, %arg2: memref<1x32xf32, #tpu.memory_space<vmem>>, %arg3: memref<1x32xf32, #tpu.memory_space<vmem>>, %arg4: memref<32x96xbf16, #tpu.memory_space<vmem>>, %arg5: memref<1x96xf32, #tpu.memory_space<vmem>>, %arg6: memref<32x32xbf16, #tpu.memory_space<vmem>>, %arg7: memref<1x32xf32, #tpu.memory_space<vmem>>, %arg8: memref<1x32xf32, #tpu.memory_space<vmem>>, %arg9: memref<1x32xf32, #tpu.memory_space<vmem>>, %arg10: memref<32x128xbf16, #tpu.memory_space<vmem>>, %arg11: memref<1x128xf32, #tpu.memory_space<vmem>>, %arg12: memref<128x32xbf16, #tpu.memory_space<vmem>>, %arg13: memref<1x32xf32, #tpu.memory_space<vmem>>, %arg14: memref<1x32xf32, #tpu.memory_space<vmem>>, %arg15: memref<1x32xf32, #tpu.memory_space<vmem>>, %arg16: memref<1x5x32xf32, #tpu.memory_space<vmem>>) attributes {dimension_semantics = [#tpu.dimension_semantics<parallel>], iteration_bounds = array<i64: 2>, scalar_prefetch = 0 : i64, scratch_operands = 0 : i64, tpu.core_type = #tpu.core_type<tc>, window_params = [{transform_indices = @transform_0, window_bounds = array<i64: 1, 5, 32>}, {pipeline_mode = #tpu.pipeline_mode<synchronous>, transform_indices = @transform_1, window_bounds = array<i64: 1, 32>}, {pipeline_mode = #tpu.pipeline_mode<synchronous>, transform_indices = @transform_2, window_bounds = array<i64: 1, 32>}, {pipeline_mode = #tpu.pipeline_mode<synchronous>, transform_indices = @transform_3, window_bounds = array<i64: 32, 96>}, {pipeline_mode = #tpu.pipeline_mode<synchronous>, transform_indices = @transform_4, window_bounds = array<i64: 1, 96>}, {pipeline_mode = #tpu.pipeline_mode<synchronous>, transform_indices = @transform_5, window_bounds = array<i64: 32, 32>}, {pipeline_mode = #tpu.pipeline_mode<synchronous>, transform_indices = @transform_6, window_bounds = array<i64: 1, 32>}, {pipeline_mode = #tpu.pipeline_mode<synchronous>, transform_indices = @transform_7, window_bounds = array<i64: 1, 32>}, {pipeline_mode = #tpu.pipeline_mode<synchronous>, transform_indices = @transform_8, window_bounds = array<i64: 1, 32>}, {pipeline_mode = #tpu.pipeline_mode<synchronous>, transform_indices = @transform_9, window_bounds = array<i64: 32, 128>}, {pipeline_mode = #tpu.pipeline_mode<synchronous>, transform_indices = @transform_10, window_bounds = array<i64: 1, 128>}, {pipeline_mode = #tpu.pipeline_mode<synchronous>, transform_indices = @transform_11, window_bounds = array<i64: 128, 32>}, {pipeline_mode = #tpu.pipeline_mode<synchronous>, transform_indices = @transform_12, window_bounds = array<i64: 1, 32>}, {pipeline_mode = #tpu.pipeline_mode<synchronous>, transform_indices = @transform_13, window_bounds = array<i64: 1, 32>}, {pipeline_mode = #tpu.pipeline_mode<synchronous>, transform_indices = @transform_14, window_bounds = array<i64: 1, 32>}, {transform_indices = @transform_15, window_bounds = array<i64: 1, 5, 32>}]} {
    %c0 = arith.constant 0 : index
    %c0_0 = arith.constant 0 : index
    %c0_1 = arith.constant 0 : index
    %0 = vector.load %arg1[%c0, %c0_0, %c0_1] : memref<1x5x32xbf16, #tpu.memory_space<vmem>>, vector<1x5x32xbf16>
    %1 = vector.shape_cast %0 : vector<1x5x32xbf16> to vector<5x32xbf16>
    %2 = arith.extf %1 : vector<5x32xbf16> to vector<5x32xf32>
    %c0_2 = arith.constant 0 : index
    %c0_3 = arith.constant 0 : index
    %3 = vector.load %arg2[%c0_2, %c0_3] : memref<1x32xf32, #tpu.memory_space<vmem>>, vector<1x32xf32>
    %c0_4 = arith.constant 0 : index
    %c0_5 = arith.constant 0 : index
    %4 = vector.load %arg3[%c0_4, %c0_5] : memref<1x32xf32, #tpu.memory_space<vmem>>, vector<1x32xf32>
    %cst = arith.constant dense<0.000000e+00> : vector<5xf32>
    %5 = vector.multi_reduction <add>, %2, %cst [1] : vector<5x32xf32> to vector<5xf32>
    %6 = vector.shape_cast %5 : vector<5xf32> to vector<5x1xf32>
    %cst_6 = arith.constant 3.200000e+01 : f32
    %7 = vector.broadcast %cst_6 : f32 to vector<5x1xf32>
    %8 = arith.divf %6, %7 : vector<5x1xf32>
    %9 = vector.broadcast %8 : vector<5x1xf32> to vector<5x32xf32>
    %10 = arith.subf %2, %9 : vector<5x32xf32>
    %11 = arith.mulf %10, %10 : vector<5x32xf32>
    %cst_7 = arith.constant dense<0.000000e+00> : vector<5xf32>
    %12 = vector.multi_reduction <add>, %11, %cst_7 [1] : vector<5x32xf32> to vector<5xf32>
    %13 = vector.shape_cast %12 : vector<5xf32> to vector<5x1xf32>
    %cst_8 = arith.constant 3.200000e+01 : f32
    %14 = vector.broadcast %cst_8 : f32 to vector<5x1xf32>
    %15 = arith.divf %13, %14 : vector<5x1xf32>
    %cst_9 = arith.constant 9.99999974E-6 : f32
    %16 = vector.broadcast %cst_9 : f32 to vector<5x1xf32>
    %17 = arith.addf %15, %16 : vector<5x1xf32>
    %18 = math.rsqrt %17 : vector<5x1xf32>
    %19 = vector.broadcast %18 : vector<5x1xf32> to vector<5x32xf32>
    %20 = arith.mulf %10, %19 : vector<5x32xf32>
    %21 = vector.broadcast %3 : vector<1x32xf32> to vector<5x32xf32>
    %22 = arith.mulf %20, %21 : vector<5x32xf32>
    %23 = vector.broadcast %4 : vector<1x32xf32> to vector<5x32xf32>
    %24 = arith.addf %22, %23 : vector<5x32xf32>
    %25 = arith.truncf %24 : vector<5x32xf32> to vector<5x32xbf16>
    %c0_10 = arith.constant 0 : index
    %c0_11 = arith.constant 0 : index
    %26 = vector.load %arg4[%c0_10, %c0_11] : memref<32x96xbf16, #tpu.memory_space<vmem>>, vector<32x96xbf16>
    %cst_12 = arith.constant dense<0.000000e+00> : vector<5x96xf32>
    %27 = tpu.matmul %25, %26, %cst_12 {dimension_numbers = #tpu.dot_dimension_numbers<[1], [0], [0], [1], [0, 0, 1, 1], [], []>} : vector<5x32xbf16>, vector<32x96xbf16>, vector<5x96xf32> -> vector<5x96xf32>
    %c0_13 = arith.constant 0 : index
    %c0_14 = arith.constant 0 : index
    %28 = vector.load %arg5[%c0_13, %c0_14] : memref<1x96xf32, #tpu.memory_space<vmem>>, vector<1x96xf32>
    %29 = vector.broadcast %28 : vector<1x96xf32> to vector<5x96xf32>
    %30 = arith.addf %27, %29 : vector<5x96xf32>
    %31 = arith.truncf %30 : vector<5x96xf32> to vector<5x96xbf16>
    %32 = vector.extract_strided_slice %31 {offsets = [0, 0], sizes = [5, 32], strides = [1, 1]} : vector<5x96xbf16> to vector<5x32xbf16>
    %33 = vector.extract_strided_slice %32 {offsets = [0, 0], sizes = [5, 8], strides = [1, 1]} : vector<5x32xbf16> to vector<5x8xbf16>
    %34 = vector.extract_strided_slice %32 {offsets = [0, 8], sizes = [5, 8], strides = [1, 1]} : vector<5x32xbf16> to vector<5x8xbf16>
    %35 = vector.extract_strided_slice %32 {offsets = [0, 16], sizes = [5, 8], strides = [1, 1]} : vector<5x32xbf16> to vector<5x8xbf16>
    %36 = vector.extract_strided_slice %32 {offsets = [0, 24], sizes = [5, 8], strides = [1, 1]} : vector<5x32xbf16> to vector<5x8xbf16>
    %37 = vector.shape_cast %33 : vector<5x8xbf16> to vector<1x5x8xbf16>
    %38 = vector.shape_cast %34 : vector<5x8xbf16> to vector<1x5x8xbf16>
    %39 = vector.shape_cast %35 : vector<5x8xbf16> to vector<1x5x8xbf16>
    %40 = vector.shape_cast %36 : vector<5x8xbf16> to vector<1x5x8xbf16>
    %41 = tpu.concatenate %37, %38, %39, %40 in 0 : vector<1x5x8xbf16>, vector<1x5x8xbf16>, vector<1x5x8xbf16>, vector<1x5x8xbf16> -> vector<4x5x8xbf16>
    %42 = vector.extract_strided_slice %31 {offsets = [0, 32], sizes = [5, 32], strides = [1, 1]} : vector<5x96xbf16> to vector<5x32xbf16>
    %43 = vector.extract_strided_slice %42 {offsets = [0, 0], sizes = [5, 8], strides = [1, 1]} : vector<5x32xbf16> to vector<5x8xbf16>
    %44 = vector.extract_strided_slice %42 {offsets = [0, 8], sizes = [5, 8], strides = [1, 1]} : vector<5x32xbf16> to vector<5x8xbf16>
    %45 = vector.extract_strided_slice %42 {offsets = [0, 16], sizes = [5, 8], strides = [1, 1]} : vector<5x32xbf16> to vector<5x8xbf16>
    %46 = vector.extract_strided_slice %42 {offsets = [0, 24], sizes = [5, 8], strides = [1, 1]} : vector<5x32xbf16> to vector<5x8xbf16>
    %47 = vector.shape_cast %43 : vector<5x8xbf16> to vector<1x5x8xbf16>
    %48 = vector.shape_cast %44 : vector<5x8xbf16> to vector<1x5x8xbf16>
    %49 = vector.shape_cast %45 : vector<5x8xbf16> to vector<1x5x8xbf16>
    %50 = vector.shape_cast %46 : vector<5x8xbf16> to vector<1x5x8xbf16>
    %51 = tpu.concatenate %47, %48, %49, %50 in 0 : vector<1x5x8xbf16>, vector<1x5x8xbf16>, vector<1x5x8xbf16>, vector<1x5x8xbf16> -> vector<4x5x8xbf16>
    %52 = vector.extract_strided_slice %31 {offsets = [0, 64], sizes = [5, 32], strides = [1, 1]} : vector<5x96xbf16> to vector<5x32xbf16>
    %53 = vector.extract_strided_slice %52 {offsets = [0, 0], sizes = [5, 8], strides = [1, 1]} : vector<5x32xbf16> to vector<5x8xbf16>
    %54 = vector.extract_strided_slice %52 {offsets = [0, 8], sizes = [5, 8], strides = [1, 1]} : vector<5x32xbf16> to vector<5x8xbf16>
    %55 = vector.extract_strided_slice %52 {offsets = [0, 16], sizes = [5, 8], strides = [1, 1]} : vector<5x32xbf16> to vector<5x8xbf16>
    %56 = vector.extract_strided_slice %52 {offsets = [0, 24], sizes = [5, 8], strides = [1, 1]} : vector<5x32xbf16> to vector<5x8xbf16>
    %57 = vector.shape_cast %53 : vector<5x8xbf16> to vector<1x5x8xbf16>
    %58 = vector.shape_cast %54 : vector<5x8xbf16> to vector<1x5x8xbf16>
    %59 = vector.shape_cast %55 : vector<5x8xbf16> to vector<1x5x8xbf16>
    %60 = vector.shape_cast %56 : vector<5x8xbf16> to vector<1x5x8xbf16>
    %61 = tpu.concatenate %57, %58, %59, %60 in 0 : vector<1x5x8xbf16>, vector<1x5x8xbf16>, vector<1x5x8xbf16>, vector<1x5x8xbf16> -> vector<4x5x8xbf16>
    %cst_15 = arith.constant dense<0.000000e+00> : vector<4x5x5xf32>
    %62 = tpu.matmul %41, %51, %cst_15 {dimension_numbers = #tpu.dot_dimension_numbers<[2], [2], [1], [1], [0, 0, 0, 1, 1, 1], [0], [0]>} : vector<4x5x8xbf16>, vector<4x5x8xbf16>, vector<4x5x5xf32> -> vector<4x5x5xf32>
    %cst_16 = arith.constant dense<0xFF800000> : vector<4x5xf32>
    %63 = vector.multi_reduction <maximumf>, %62, %cst_16 [2] : vector<4x5x5xf32> to vector<4x5xf32>
    %64 = vector.shape_cast %63 : vector<4x5xf32> to vector<4x5x1xf32>
    %65 = vector.broadcast %64 : vector<4x5x1xf32> to vector<4x5x5xf32>
    %66 = arith.subf %62, %65 : vector<4x5x5xf32>
    %67 = math.exp %66 : vector<4x5x5xf32>
    %cst_17 = arith.constant dense<0.000000e+00> : vector<4x5xf32>
    %68 = vector.multi_reduction <add>, %67, %cst_17 [2] : vector<4x5x5xf32> to vector<4x5xf32>
    %69 = vector.shape_cast %68 : vector<4x5xf32> to vector<4x5x1xf32>
    %70 = vector.broadcast %69 : vector<4x5x1xf32> to vector<4x5x5xf32>
    %71 = arith.divf %67, %70 : vector<4x5x5xf32>
    %72 = arith.truncf %71 : vector<4x5x5xf32> to vector<4x5x5xbf16>
    %cst_18 = arith.constant dense<0.000000e+00> : vector<4x5x8xf32>
    %73 = tpu.matmul %72, %61, %cst_18 {dimension_numbers = #tpu.dot_dimension_numbers<[2], [1], [1], [2], [0, 0, 0, 1, 1, 2], [0], [0]>} : vector<4x5x5xbf16>, vector<4x5x8xbf16>, vector<4x5x8xf32> -> vector<4x5x8xf32>
    %74 = vector.extract_strided_slice %73 {offsets = [0, 0, 0], sizes = [1, 5, 8], strides = [1, 1, 1]} : vector<4x5x8xf32> to vector<1x5x8xf32>
    %75 = vector.shape_cast %74 : vector<1x5x8xf32> to vector<5x8xf32>
    %76 = vector.extract_strided_slice %73 {offsets = [1, 0, 0], sizes = [1, 5, 8], strides = [1, 1, 1]} : vector<4x5x8xf32> to vector<1x5x8xf32>
    %77 = vector.shape_cast %76 : vector<1x5x8xf32> to vector<5x8xf32>
    %78 = vector.extract_strided_slice %73 {offsets = [2, 0, 0], sizes = [1, 5, 8], strides = [1, 1, 1]} : vector<4x5x8xf32> to vector<1x5x8xf32>
    %79 = vector.shape_cast %78 : vector<1x5x8xf32> to vector<5x8xf32>
    %80 = vector.extract_strided_slice %73 {offsets = [3, 0, 0], sizes = [1, 5, 8], strides = [1, 1, 1]} : vector<4x5x8xf32> to vector<1x5x8xf32>
    %81 = vector.shape_cast %80 : vector<1x5x8xf32> to vector<5x8xf32>
    %82 = tpu.concatenate %75, %77, %79, %81 in 1 : vector<5x8xf32>, vector<5x8xf32>, vector<5x8xf32>, vector<5x8xf32> -> vector<5x32xf32>
    %83 = arith.truncf %82 : vector<5x32xf32> to vector<5x32xbf16>
    %c0_19 = arith.constant 0 : index
    %c0_20 = arith.constant 0 : index
    %84 = vector.load %arg6[%c0_19, %c0_20] : memref<32x32xbf16, #tpu.memory_space<vmem>>, vector<32x32xbf16>
    %cst_21 = arith.constant dense<0.000000e+00> : vector<5x32xf32>
    %85 = tpu.matmul %83, %84, %cst_21 {dimension_numbers = #tpu.dot_dimension_numbers<[1], [0], [0], [1], [0, 0, 1, 1], [], []>} : vector<5x32xbf16>, vector<32x32xbf16>, vector<5x32xf32> -> vector<5x32xf32>
    %86 = arith.addf %2, %85 : vector<5x32xf32>
    %c0_22 = arith.constant 0 : index
    %c0_23 = arith.constant 0 : index
    %87 = vector.load %arg7[%c0_22, %c0_23] : memref<1x32xf32, #tpu.memory_space<vmem>>, vector<1x32xf32>
    %88 = vector.broadcast %87 : vector<1x32xf32> to vector<5x32xf32>
    %89 = arith.addf %86, %88 : vector<5x32xf32>
    %c0_24 = arith.constant 0 : index
    %c0_25 = arith.constant 0 : index
    %90 = vector.load %arg8[%c0_24, %c0_25] : memref<1x32xf32, #tpu.memory_space<vmem>>, vector<1x32xf32>
    %c0_26 = arith.constant 0 : index
    %c0_27 = arith.constant 0 : index
    %91 = vector.load %arg9[%c0_26, %c0_27] : memref<1x32xf32, #tpu.memory_space<vmem>>, vector<1x32xf32>
    %cst_28 = arith.constant dense<0.000000e+00> : vector<5xf32>
    %92 = vector.multi_reduction <add>, %89, %cst_28 [1] : vector<5x32xf32> to vector<5xf32>
    %93 = vector.shape_cast %92 : vector<5xf32> to vector<5x1xf32>
    %cst_29 = arith.constant 3.200000e+01 : f32
    %94 = vector.broadcast %cst_29 : f32 to vector<5x1xf32>
    %95 = arith.divf %93, %94 : vector<5x1xf32>
    %96 = vector.broadcast %95 : vector<5x1xf32> to vector<5x32xf32>
    %97 = arith.subf %89, %96 : vector<5x32xf32>
    %98 = arith.mulf %97, %97 : vector<5x32xf32>
    %cst_30 = arith.constant dense<0.000000e+00> : vector<5xf32>
    %99 = vector.multi_reduction <add>, %98, %cst_30 [1] : vector<5x32xf32> to vector<5xf32>
    %100 = vector.shape_cast %99 : vector<5xf32> to vector<5x1xf32>
    %cst_31 = arith.constant 3.200000e+01 : f32
    %101 = vector.broadcast %cst_31 : f32 to vector<5x1xf32>
    %102 = arith.divf %100, %101 : vector<5x1xf32>
    %cst_32 = arith.constant 9.99999974E-6 : f32
    %103 = vector.broadcast %cst_32 : f32 to vector<5x1xf32>
    %104 = arith.addf %102, %103 : vector<5x1xf32>
    %105 = math.rsqrt %104 : vector<5x1xf32>
    %106 = vector.broadcast %105 : vector<5x1xf32> to vector<5x32xf32>
    %107 = arith.mulf %97, %106 : vector<5x32xf32>
    %108 = vector.broadcast %90 : vector<1x32xf32> to vector<5x32xf32>
    %109 = arith.mulf %107, %108 : vector<5x32xf32>
    %110 = vector.broadcast %91 : vector<1x32xf32> to vector<5x32xf32>
    %111 = arith.addf %109, %110 : vector<5x32xf32>
    %112 = arith.truncf %111 : vector<5x32xf32> to vector<5x32xbf16>
    %c0_33 = arith.constant 0 : index
    %c0_34 = arith.constant 0 : index
    %113 = vector.load %arg10[%c0_33, %c0_34] : memref<32x128xbf16, #tpu.memory_space<vmem>>, vector<32x128xbf16>
    %cst_35 = arith.constant dense<0.000000e+00> : vector<5x128xf32>
    %114 = tpu.matmul %112, %113, %cst_35 {dimension_numbers = #tpu.dot_dimension_numbers<[1], [0], [0], [1], [0, 0, 1, 1], [], []>} : vector<5x32xbf16>, vector<32x128xbf16>, vector<5x128xf32> -> vector<5x128xf32>
    %c0_36 = arith.constant 0 : index
    %c0_37 = arith.constant 0 : index
    %115 = vector.load %arg11[%c0_36, %c0_37] : memref<1x128xf32, #tpu.memory_space<vmem>>, vector<1x128xf32>
    %116 = vector.broadcast %115 : vector<1x128xf32> to vector<5x128xf32>
    %117 = arith.addf %114, %116 : vector<5x128xf32>
    %cst_38 = arith.constant 5.000000e-01 : f32
    %118 = vector.broadcast %cst_38 : f32 to vector<5x128xf32>
    %119 = arith.mulf %118, %117 : vector<5x128xf32>
    %cst_39 = arith.constant 4.471500e-02 : f32
    %120 = vector.broadcast %cst_39 : f32 to vector<5x128xf32>
    %121 = arith.mulf %120, %117 : vector<5x128xf32>
    %122 = arith.mulf %121, %117 : vector<5x128xf32>
    %123 = arith.mulf %122, %117 : vector<5x128xf32>
    %124 = arith.addf %117, %123 : vector<5x128xf32>
    %cst_40 = arith.constant 0.797884583 : f32
    %125 = vector.broadcast %cst_40 : f32 to vector<5x128xf32>
    %126 = arith.mulf %125, %124 : vector<5x128xf32>
    %127 = math.tanh %126 : vector<5x128xf32>
    %cst_41 = arith.constant 1.000000e+00 : f32
    %128 = vector.broadcast %cst_41 : f32 to vector<5x128xf32>
    %129 = arith.addf %128, %127 : vector<5x128xf32>
    %130 = arith.mulf %119, %129 : vector<5x128xf32>
    %131 = arith.truncf %130 : vector<5x128xf32> to vector<5x128xbf16>
    %c0_42 = arith.constant 0 : index
    %c0_43 = arith.constant 0 : index
    %132 = vector.load %arg12[%c0_42, %c0_43] : memref<128x32xbf16, #tpu.memory_space<vmem>>, vector<128x32xbf16>
    %cst_44 = arith.constant dense<0.000000e+00> : vector<5x32xf32>
    %133 = tpu.matmul %131, %132, %cst_44 {dimension_numbers = #tpu.dot_dimension_numbers<[1], [0], [0], [1], [0, 0, 1, 1], [], []>} : vector<5x128xbf16>, vector<128x32xbf16>, vector<5x32xf32> -> vector<5x32xf32>
    %c0_45 = arith.constant 0 : index
    %c0_46 = arith.constant 0 : index
    %134 = vector.load %arg13[%c0_45, %c0_46] : memref<1x32xf32, #tpu.memory_space<vmem>>, vector<1x32xf32>
    %135 = vector.broadcast %134 : vector<1x32xf32> to vector<5x32xf32>
    %136 = arith.addf %133, %135 : vector<5x32xf32>
    %137 = arith.addf %89, %136 : vector<5x32xf32>
    %c0_47 = arith.constant 0 : index
    %c0_48 = arith.constant 0 : index
    %138 = vector.load %arg14[%c0_47, %c0_48] : memref<1x32xf32, #tpu.memory_space<vmem>>, vector<1x32xf32>
    %c0_49 = arith.constant 0 : index
    %c0_50 = arith.constant 0 : index
    %139 = vector.load %arg15[%c0_49, %c0_50] : memref<1x32xf32, #tpu.memory_space<vmem>>, vector<1x32xf32>
    %cst_51 = arith.constant dense<0.000000e+00> : vector<5xf32>
    %140 = vector.multi_reduction <add>, %137, %cst_51 [1] : vector<5x32xf32> to vector<5xf32>
    %141 = vector.shape_cast %140 : vector<5xf32> to vector<5x1xf32>
    %cst_52 = arith.constant 3.200000e+01 : f32
    %142 = vector.broadcast %cst_52 : f32 to vector<5x1xf32>
    %143 = arith.divf %141, %142 : vector<5x1xf32>
    %144 = vector.broadcast %143 : vector<5x1xf32> to vector<5x32xf32>
    %145 = arith.subf %137, %144 : vector<5x32xf32>
    %146 = arith.mulf %145, %145 : vector<5x32xf32>
    %cst_53 = arith.constant dense<0.000000e+00> : vector<5xf32>
    %147 = vector.multi_reduction <add>, %146, %cst_53 [1] : vector<5x32xf32> to vector<5xf32>
    %148 = vector.shape_cast %147 : vector<5xf32> to vector<5x1xf32>
    %cst_54 = arith.constant 3.200000e+01 : f32
    %149 = vector.broadcast %cst_54 : f32 to vector<5x1xf32>
    %150 = arith.divf %148, %149 : vector<5x1xf32>
    %cst_55 = arith.constant 9.99999974E-6 : f32
    %151 = vector.broadcast %cst_55 : f32 to vector<5x1xf32>
    %152 = arith.addf %150, %151 : vector<5x1xf32>
    %153 = math.rsqrt %152 : vector<5x1xf32>
    %154 = vector.broadcast %153 : vector<5x1xf32> to vector<5x32xf32>
    %155 = arith.mulf %145, %154 : vector<5x32xf32>
    %156 = vector.broadcast %138 : vector<1x32xf32> to vector<5x32xf32>
    %157 = arith.mulf %155, %156 : vector<5x32xf32>
    %158 = vector.broadcast %139 : vector<1x32xf32> to vector<5x32xf32>
    %159 = arith.addf %157, %158 : vector<5x32xf32>
    %c0_56 = arith.constant 0 : index
    %c0_57 = arith.constant 0 : index
    %c0_58 = arith.constant 0 : index
    %160 = vector.load %arg16[%c0_56, %c0_57, %c0_58] : memref<1x5x32xf32, #tpu.memory_space<vmem>>, vector<1x5x32xf32>
    %161 = vector.shape_cast %160 : vector<1x5x32xf32> to vector<5x32xf32>
    %162 = vector.shape_cast %159 : vector<5x32xf32> to vector<1x5x32xf32>
    tpu.vector_store %arg16[%c0_56, %c0_57, %c0_58], %162 {strides = array<i32>} : memref<1x5x32xf32, #tpu.memory_space<vmem>>, vector<1x5x32xf32>,
    return
  }
  func.func @transform_0(%arg0: i32) -> (i32, i32, i32) {
    %c0_i32 = arith.constant 0 : i32
    %c0_i32_0 = arith.constant 0 : i32
    %c0_i32_1 = arith.constant 0 : i32
    return %arg0, %c0_i32, %c0_i32_0 : i32, i32, i32
  }
  func.func @transform_1(%arg0: i32) -> (i32, i32) {
    %c0_i32 = arith.constant 0 : i32
    %c0_i32_0 = arith.constant 0 : i32
    %c0_i32_1 = arith.constant 0 : i32
    return %c0_i32, %c0_i32_0 : i32, i32
  }
  func.func @transform_2(%arg0: i32) -> (i32, i32) {
    %c0_i32 = arith.constant 0 : i32
    %c0_i32_0 = arith.constant 0 : i32
    %c0_i32_1 = arith.constant 0 : i32
    return %c0_i32, %c0_i32_0 : i32, i32
  }
  func.func @transform_3(%arg0: i32) -> (i32, i32) {
    %c0_i32 = arith.constant 0 : i32
    %c0_i32_0 = arith.constant 0 : i32
    %c0_i32_1 = arith.constant 0 : i32
    return %c0_i32, %c0_i32_0 : i32, i32
  }
  func.func @transform_4(%arg0: i32) -> (i32, i32) {
    %c0_i32 = arith.constant 0 : i32
    %c0_i32_0 = arith.constant 0 : i32
    %c0_i32_1 = arith.constant 0 : i32
    return %c0_i32, %c0_i32_0 : i32, i32
  }
  func.func @transform_5(%arg0: i32) -> (i32, i32) {
    %c0_i32 = arith.constant 0 : i32
    %c0_i32_0 = arith.constant 0 : i32
    %c0_i32_1 = arith.constant 0 : i32
    return %c0_i32, %c0_i32_0 : i32, i32
  }
  func.func @transform_6(%arg0: i32) -> (i32, i32) {
    %c0_i32 = arith.constant 0 : i32
    %c0_i32_0 = arith.constant 0 : i32
    %c0_i32_1 = arith.constant 0 : i32
    return %c0_i32, %c0_i32_0 : i32, i32
  }
  func.func @transform_7(%arg0: i32) -> (i32, i32) {
    %c0_i32 = arith.constant 0 : i32
    %c0_i32_0 = arith.constant 0 : i32
    %c0_i32_1 = arith.constant 0 : i32
    return %c0_i32, %c0_i32_0 : i32, i32
  }
  func.func @transform_8(%arg0: i32) -> (i32, i32) {
    %c0_i32 = arith.constant 0 : i32
    %c0_i32_0 = arith.constant 0 : i32
    %c0_i32_1 = arith.constant 0 : i32
    return %c0_i32, %c0_i32_0 : i32, i32
  }
  func.func @transform_9(%arg0: i32) -> (i32, i32) {
    %c0_i32 = arith.constant 0 : i32
    %c0_i32_0 = arith.constant 0 : i32
    %c0_i32_1 = arith.constant 0 : i32
    return %c0_i32, %c0_i32_0 : i32, i32
  }
  func.func @transform_10(%arg0: i32) -> (i32, i32) {
    %c0_i32 = arith.constant 0 : i32
    %c0_i32_0 = arith.constant 0 : i32
    %c0_i32_1 = arith.constant 0 : i32
    return %c0_i32, %c0_i32_0 : i32, i32
  }
  func.func @transform_11(%arg0: i32) -> (i32, i32) {
    %c0_i32 = arith.constant 0 : i32
    %c0_i32_0 = arith.constant 0 : i32
    %c0_i32_1 = arith.constant 0 : i32
    return %c0_i32, %c0_i32_0 : i32, i32
  }
  func.func @transform_12(%arg0: i32) -> (i32, i32) {
    %c0_i32 = arith.constant 0 : i32
    %c0_i32_0 = arith.constant 0 : i32
    %c0_i32_1 = arith.constant 0 : i32
    return %c0_i32, %c0_i32_0 : i32, i32
  }
  func.func @transform_13(%arg0: i32) -> (i32, i32) {
    %c0_i32 = arith.constant 0 : i32
    %c0_i32_0 = arith.constant 0 : i32
    %c0_i32_1 = arith.constant 0 : i32
    return %c0_i32, %c0_i32_0 : i32, i32
  }
  func.func @transform_14(%arg0: i32) -> (i32, i32) {
    %c0_i32 = arith.constant 0 : i32
    %c0_i32_0 = arith.constant 0 : i32
    %c0_i32_1 = arith.constant 0 : i32
    return %c0_i32, %c0_i32_0 : i32, i32
  }
  func.func @transform_15(%arg0: i32) -> (i32, i32, i32) {
    %c0_i32 = arith.constant 0 : i32
    %c0_i32_0 = arith.constant 0 : i32
    %c0_i32_1 = arith.constant 0 : i32
    return %arg0, %c0_i32, %c0_i32_0 : i32, i32, i32
  }
}

module attributes {stable_mosaic.version = 11 : i64} {
  func.func @_block_kernel(%arg0: i32, %arg1: memref<1x5x32xbf16, #tpu.memory_space<vmem>>, %arg2: memref<1x32xf32, #tpu.memory_space<vmem>>, %arg3: memref<1x32xf32, #tpu.memory_space<vmem>>, %arg4: memref<32x96xbf16, #tpu.memory_space<vmem>>, %arg5: memref<1x96xf32, #tpu.memory_space<vmem>>, %arg6: memref<32x32xbf16, #tpu.memory_space<vmem>>, %arg7: memref<1x32xf32, #tpu.memory_space<vmem>>, %arg8: memref<1x32xf32, #tpu.memory_space<vmem>>, %arg9: memref<1x32xf32, #tpu.memory_space<vmem>>, %arg10: memref<32x128xbf16, #tpu.memory_space<vmem>>, %arg11: memref<1x128xf32, #tpu.memory_space<vmem>>, %arg12: memref<128x32xbf16, #tpu.memory_space<vmem>>, %arg13: memref<1x32xf32, #tpu.memory_space<vmem>>, %arg14: memref<1x5x32xbf16, #tpu.memory_space<vmem>>) attributes {dimension_semantics = [#tpu.dimension_semantics<parallel>], iteration_bounds = array<i64: 2>, scalar_prefetch = 0 : i64, scratch_operands = 0 : i64, tpu.core_type = #tpu.core_type<tc>, window_params = [{transform_indices = @transform_0, window_bounds = array<i64: 1, 5, 32>}, {pipeline_mode = #tpu.pipeline_mode<synchronous>, transform_indices = @transform_1, window_bounds = array<i64: 1, 32>}, {pipeline_mode = #tpu.pipeline_mode<synchronous>, transform_indices = @transform_2, window_bounds = array<i64: 1, 32>}, {pipeline_mode = #tpu.pipeline_mode<synchronous>, transform_indices = @transform_3, window_bounds = array<i64: 32, 96>}, {pipeline_mode = #tpu.pipeline_mode<synchronous>, transform_indices = @transform_4, window_bounds = array<i64: 1, 96>}, {pipeline_mode = #tpu.pipeline_mode<synchronous>, transform_indices = @transform_5, window_bounds = array<i64: 32, 32>}, {pipeline_mode = #tpu.pipeline_mode<synchronous>, transform_indices = @transform_6, window_bounds = array<i64: 1, 32>}, {pipeline_mode = #tpu.pipeline_mode<synchronous>, transform_indices = @transform_7, window_bounds = array<i64: 1, 32>}, {pipeline_mode = #tpu.pipeline_mode<synchronous>, transform_indices = @transform_8, window_bounds = array<i64: 1, 32>}, {pipeline_mode = #tpu.pipeline_mode<synchronous>, transform_indices = @transform_9, window_bounds = array<i64: 32, 128>}, {pipeline_mode = #tpu.pipeline_mode<synchronous>, transform_indices = @transform_10, window_bounds = array<i64: 1, 128>}, {pipeline_mode = #tpu.pipeline_mode<synchronous>, transform_indices = @transform_11, window_bounds = array<i64: 128, 32>}, {pipeline_mode = #tpu.pipeline_mode<synchronous>, transform_indices = @transform_12, window_bounds = array<i64: 1, 32>}, {transform_indices = @transform_13, window_bounds = array<i64: 1, 5, 32>}]} {
    %c0 = arith.constant 0 : index
    %c0_0 = arith.constant 0 : index
    %c0_1 = arith.constant 0 : index
    %0 = vector.load %arg1[%c0, %c0_0, %c0_1] : memref<1x5x32xbf16, #tpu.memory_space<vmem>>, vector<1x5x32xbf16>
    %1 = vector.shape_cast %0 : vector<1x5x32xbf16> to vector<5x32xbf16>
    %2 = arith.extf %1 : vector<5x32xbf16> to vector<5x32xf32>
    %c0_2 = arith.constant 0 : index
    %c0_3 = arith.constant 0 : index
    %3 = vector.load %arg2[%c0_2, %c0_3] : memref<1x32xf32, #tpu.memory_space<vmem>>, vector<1x32xf32>
    %c0_4 = arith.constant 0 : index
    %c0_5 = arith.constant 0 : index
    %4 = vector.load %arg3[%c0_4, %c0_5] : memref<1x32xf32, #tpu.memory_space<vmem>>, vector<1x32xf32>
    %cst = arith.constant dense<0.000000e+00> : vector<5xf32>
    %5 = vector.multi_reduction <add>, %2, %cst [1] : vector<5x32xf32> to vector<5xf32>
    %6 = vector.shape_cast %5 : vector<5xf32> to vector<5x1xf32>
    %cst_6 = arith.constant 3.200000e+01 : f32
    %7 = vector.broadcast %cst_6 : f32 to vector<5x1xf32>
    %8 = arith.divf %6, %7 : vector<5x1xf32>
    %9 = vector.broadcast %8 : vector<5x1xf32> to vector<5x32xf32>
    %10 = arith.subf %2, %9 : vector<5x32xf32>
    %11 = arith.mulf %10, %10 : vector<5x32xf32>
    %cst_7 = arith.constant dense<0.000000e+00> : vector<5xf32>
    %12 = vector.multi_reduction <add>, %11, %cst_7 [1] : vector<5x32xf32> to vector<5xf32>
    %13 = vector.shape_cast %12 : vector<5xf32> to vector<5x1xf32>
    %cst_8 = arith.constant 3.200000e+01 : f32
    %14 = vector.broadcast %cst_8 : f32 to vector<5x1xf32>
    %15 = arith.divf %13, %14 : vector<5x1xf32>
    %cst_9 = arith.constant 9.99999974E-6 : f32
    %16 = vector.broadcast %cst_9 : f32 to vector<5x1xf32>
    %17 = arith.addf %15, %16 : vector<5x1xf32>
    %18 = math.rsqrt %17 : vector<5x1xf32>
    %19 = vector.broadcast %18 : vector<5x1xf32> to vector<5x32xf32>
    %20 = arith.mulf %10, %19 : vector<5x32xf32>
    %21 = vector.broadcast %3 : vector<1x32xf32> to vector<5x32xf32>
    %22 = arith.mulf %20, %21 : vector<5x32xf32>
    %23 = vector.broadcast %4 : vector<1x32xf32> to vector<5x32xf32>
    %24 = arith.addf %22, %23 : vector<5x32xf32>
    %25 = arith.truncf %24 : vector<5x32xf32> to vector<5x32xbf16>
    %c0_10 = arith.constant 0 : index
    %c0_11 = arith.constant 0 : index
    %26 = vector.load %arg4[%c0_10, %c0_11] : memref<32x96xbf16, #tpu.memory_space<vmem>>, vector<32x96xbf16>
    %cst_12 = arith.constant dense<0.000000e+00> : vector<5x96xf32>
    %27 = tpu.matmul %25, %26, %cst_12 {dimension_numbers = #tpu.dot_dimension_numbers<[1], [0], [0], [1], [0, 0, 1, 1], [], []>} : vector<5x32xbf16>, vector<32x96xbf16>, vector<5x96xf32> -> vector<5x96xf32>
    %c0_13 = arith.constant 0 : index
    %c0_14 = arith.constant 0 : index
    %28 = vector.load %arg5[%c0_13, %c0_14] : memref<1x96xf32, #tpu.memory_space<vmem>>, vector<1x96xf32>
    %29 = vector.broadcast %28 : vector<1x96xf32> to vector<5x96xf32>
    %30 = arith.addf %27, %29 : vector<5x96xf32>
    %31 = arith.truncf %30 : vector<5x96xf32> to vector<5x96xbf16>
    %32 = vector.extract_strided_slice %31 {offsets = [0, 0], sizes = [5, 32], strides = [1, 1]} : vector<5x96xbf16> to vector<5x32xbf16>
    %33 = vector.extract_strided_slice %32 {offsets = [0, 0], sizes = [5, 8], strides = [1, 1]} : vector<5x32xbf16> to vector<5x8xbf16>
    %34 = vector.extract_strided_slice %32 {offsets = [0, 8], sizes = [5, 8], strides = [1, 1]} : vector<5x32xbf16> to vector<5x8xbf16>
    %35 = vector.extract_strided_slice %32 {offsets = [0, 16], sizes = [5, 8], strides = [1, 1]} : vector<5x32xbf16> to vector<5x8xbf16>
    %36 = vector.extract_strided_slice %32 {offsets = [0, 24], sizes = [5, 8], strides = [1, 1]} : vector<5x32xbf16> to vector<5x8xbf16>
    %37 = vector.shape_cast %33 : vector<5x8xbf16> to vector<1x5x8xbf16>
    %38 = vector.shape_cast %34 : vector<5x8xbf16> to vector<1x5x8xbf16>
    %39 = vector.shape_cast %35 : vector<5x8xbf16> to vector<1x5x8xbf16>
    %40 = vector.shape_cast %36 : vector<5x8xbf16> to vector<1x5x8xbf16>
    %41 = tpu.concatenate %37, %38, %39, %40 in 0 : vector<1x5x8xbf16>, vector<1x5x8xbf16>, vector<1x5x8xbf16>, vector<1x5x8xbf16> -> vector<4x5x8xbf16>
    %42 = vector.extract_strided_slice %31 {offsets = [0, 32], sizes = [5, 32], strides = [1, 1]} : vector<5x96xbf16> to vector<5x32xbf16>
    %43 = vector.extract_strided_slice %42 {offsets = [0, 0], sizes = [5, 8], strides = [1, 1]} : vector<5x32xbf16> to vector<5x8xbf16>
    %44 = vector.extract_strided_slice %42 {offsets = [0, 8], sizes = [5, 8], strides = [1, 1]} : vector<5x32xbf16> to vector<5x8xbf16>
    %45 = vector.extract_strided_slice %42 {offsets = [0, 16], sizes = [5, 8], strides = [1, 1]} : vector<5x32xbf16> to vector<5x8xbf16>
    %46 = vector.extract_strided_slice %42 {offsets = [0, 24], sizes = [5, 8], strides = [1, 1]} : vector<5x32xbf16> to vector<5x8xbf16>
    %47 = vector.shape_cast %43 : vector<5x8xbf16> to vector<1x5x8xbf16>
    %48 = vector.shape_cast %44 : vector<5x8xbf16> to vector<1x5x8xbf16>
    %49 = vector.shape_cast %45 : vector<5x8xbf16> to vector<1x5x8xbf16>
    %50 = vector.shape_cast %46 : vector<5x8xbf16> to vector<1x5x8xbf16>
    %51 = tpu.concatenate %47, %48, %49, %50 in 0 : vector<1x5x8xbf16>, vector<1x5x8xbf16>, vector<1x5x8xbf16>, vector<1x5x8xbf16> -> vector<4x5x8xbf16>
    %52 = vector.extract_strided_slice %31 {offsets = [0, 64], sizes = [5, 32], strides = [1, 1]} : vector<5x96xbf16> to vector<5x32xbf16>
    %53 = vector.extract_strided_slice %52 {offsets = [0, 0], sizes = [5, 8], strides = [1, 1]} : vector<5x32xbf16> to vector<5x8xbf16>
    %54 = vector.extract_strided_slice %52 {offsets = [0, 8], sizes = [5, 8], strides = [1, 1]} : vector<5x32xbf16> to vector<5x8xbf16>
    %55 = vector.extract_strided_slice %52 {offsets = [0, 16], sizes = [5, 8], strides = [1, 1]} : vector<5x32xbf16> to vector<5x8xbf16>
    %56 = vector.extract_strided_slice %52 {offsets = [0, 24], sizes = [5, 8], strides = [1, 1]} : vector<5x32xbf16> to vector<5x8xbf16>
    %57 = vector.shape_cast %53 : vector<5x8xbf16> to vector<1x5x8xbf16>
    %58 = vector.shape_cast %54 : vector<5x8xbf16> to vector<1x5x8xbf16>
    %59 = vector.shape_cast %55 : vector<5x8xbf16> to vector<1x5x8xbf16>
    %60 = vector.shape_cast %56 : vector<5x8xbf16> to vector<1x5x8xbf16>
    %61 = tpu.concatenate %57, %58, %59, %60 in 0 : vector<1x5x8xbf16>, vector<1x5x8xbf16>, vector<1x5x8xbf16>, vector<1x5x8xbf16> -> vector<4x5x8xbf16>
    %cst_15 = arith.constant dense<0.000000e+00> : vector<4x5x5xf32>
    %62 = tpu.matmul %41, %51, %cst_15 {dimension_numbers = #tpu.dot_dimension_numbers<[2], [2], [1], [1], [0, 0, 0, 1, 1, 1], [0], [0]>} : vector<4x5x8xbf16>, vector<4x5x8xbf16>, vector<4x5x5xf32> -> vector<4x5x5xf32>
    %cst_16 = arith.constant dense<0xFF800000> : vector<4x5xf32>
    %63 = vector.multi_reduction <maximumf>, %62, %cst_16 [2] : vector<4x5x5xf32> to vector<4x5xf32>
    %64 = vector.shape_cast %63 : vector<4x5xf32> to vector<4x5x1xf32>
    %65 = vector.broadcast %64 : vector<4x5x1xf32> to vector<4x5x5xf32>
    %66 = arith.subf %62, %65 : vector<4x5x5xf32>
    %67 = math.exp %66 : vector<4x5x5xf32>
    %cst_17 = arith.constant dense<0.000000e+00> : vector<4x5xf32>
    %68 = vector.multi_reduction <add>, %67, %cst_17 [2] : vector<4x5x5xf32> to vector<4x5xf32>
    %69 = vector.shape_cast %68 : vector<4x5xf32> to vector<4x5x1xf32>
    %70 = vector.broadcast %69 : vector<4x5x1xf32> to vector<4x5x5xf32>
    %71 = arith.divf %67, %70 : vector<4x5x5xf32>
    %72 = arith.truncf %71 : vector<4x5x5xf32> to vector<4x5x5xbf16>
    %cst_18 = arith.constant dense<0.000000e+00> : vector<4x5x8xf32>
    %73 = tpu.matmul %72, %61, %cst_18 {dimension_numbers = #tpu.dot_dimension_numbers<[2], [1], [1], [2], [0, 0, 0, 1, 1, 2], [0], [0]>} : vector<4x5x5xbf16>, vector<4x5x8xbf16>, vector<4x5x8xf32> -> vector<4x5x8xf32>
    %74 = vector.extract_strided_slice %73 {offsets = [0, 0, 0], sizes = [1, 5, 8], strides = [1, 1, 1]} : vector<4x5x8xf32> to vector<1x5x8xf32>
    %75 = vector.shape_cast %74 : vector<1x5x8xf32> to vector<5x8xf32>
    %76 = vector.extract_strided_slice %73 {offsets = [1, 0, 0], sizes = [1, 5, 8], strides = [1, 1, 1]} : vector<4x5x8xf32> to vector<1x5x8xf32>
    %77 = vector.shape_cast %76 : vector<1x5x8xf32> to vector<5x8xf32>
    %78 = vector.extract_strided_slice %73 {offsets = [2, 0, 0], sizes = [1, 5, 8], strides = [1, 1, 1]} : vector<4x5x8xf32> to vector<1x5x8xf32>
    %79 = vector.shape_cast %78 : vector<1x5x8xf32> to vector<5x8xf32>
    %80 = vector.extract_strided_slice %73 {offsets = [3, 0, 0], sizes = [1, 5, 8], strides = [1, 1, 1]} : vector<4x5x8xf32> to vector<1x5x8xf32>
    %81 = vector.shape_cast %80 : vector<1x5x8xf32> to vector<5x8xf32>
    %82 = tpu.concatenate %75, %77, %79, %81 in 1 : vector<5x8xf32>, vector<5x8xf32>, vector<5x8xf32>, vector<5x8xf32> -> vector<5x32xf32>
    %83 = arith.truncf %82 : vector<5x32xf32> to vector<5x32xbf16>
    %c0_19 = arith.constant 0 : index
    %c0_20 = arith.constant 0 : index
    %84 = vector.load %arg6[%c0_19, %c0_20] : memref<32x32xbf16, #tpu.memory_space<vmem>>, vector<32x32xbf16>
    %cst_21 = arith.constant dense<0.000000e+00> : vector<5x32xf32>
    %85 = tpu.matmul %83, %84, %cst_21 {dimension_numbers = #tpu.dot_dimension_numbers<[1], [0], [0], [1], [0, 0, 1, 1], [], []>} : vector<5x32xbf16>, vector<32x32xbf16>, vector<5x32xf32> -> vector<5x32xf32>
    %86 = arith.addf %2, %85 : vector<5x32xf32>
    %c0_22 = arith.constant 0 : index
    %c0_23 = arith.constant 0 : index
    %87 = vector.load %arg7[%c0_22, %c0_23] : memref<1x32xf32, #tpu.memory_space<vmem>>, vector<1x32xf32>
    %88 = vector.broadcast %87 : vector<1x32xf32> to vector<5x32xf32>
    %89 = arith.addf %86, %88 : vector<5x32xf32>
    %c0_24 = arith.constant 0 : index
    %c0_25 = arith.constant 0 : index
    %90 = vector.load %arg8[%c0_24, %c0_25] : memref<1x32xf32, #tpu.memory_space<vmem>>, vector<1x32xf32>
    %c0_26 = arith.constant 0 : index
    %c0_27 = arith.constant 0 : index
    %91 = vector.load %arg9[%c0_26, %c0_27] : memref<1x32xf32, #tpu.memory_space<vmem>>, vector<1x32xf32>
    %cst_28 = arith.constant dense<0.000000e+00> : vector<5xf32>
    %92 = vector.multi_reduction <add>, %89, %cst_28 [1] : vector<5x32xf32> to vector<5xf32>
    %93 = vector.shape_cast %92 : vector<5xf32> to vector<5x1xf32>
    %cst_29 = arith.constant 3.200000e+01 : f32
    %94 = vector.broadcast %cst_29 : f32 to vector<5x1xf32>
    %95 = arith.divf %93, %94 : vector<5x1xf32>
    %96 = vector.broadcast %95 : vector<5x1xf32> to vector<5x32xf32>
    %97 = arith.subf %89, %96 : vector<5x32xf32>
    %98 = arith.mulf %97, %97 : vector<5x32xf32>
    %cst_30 = arith.constant dense<0.000000e+00> : vector<5xf32>
    %99 = vector.multi_reduction <add>, %98, %cst_30 [1] : vector<5x32xf32> to vector<5xf32>
    %100 = vector.shape_cast %99 : vector<5xf32> to vector<5x1xf32>
    %cst_31 = arith.constant 3.200000e+01 : f32
    %101 = vector.broadcast %cst_31 : f32 to vector<5x1xf32>
    %102 = arith.divf %100, %101 : vector<5x1xf32>
    %cst_32 = arith.constant 9.99999974E-6 : f32
    %103 = vector.broadcast %cst_32 : f32 to vector<5x1xf32>
    %104 = arith.addf %102, %103 : vector<5x1xf32>
    %105 = math.rsqrt %104 : vector<5x1xf32>
    %106 = vector.broadcast %105 : vector<5x1xf32> to vector<5x32xf32>
    %107 = arith.mulf %97, %106 : vector<5x32xf32>
    %108 = vector.broadcast %90 : vector<1x32xf32> to vector<5x32xf32>
    %109 = arith.mulf %107, %108 : vector<5x32xf32>
    %110 = vector.broadcast %91 : vector<1x32xf32> to vector<5x32xf32>
    %111 = arith.addf %109, %110 : vector<5x32xf32>
    %112 = arith.truncf %111 : vector<5x32xf32> to vector<5x32xbf16>
    %c0_33 = arith.constant 0 : index
    %c0_34 = arith.constant 0 : index
    %113 = vector.load %arg10[%c0_33, %c0_34] : memref<32x128xbf16, #tpu.memory_space<vmem>>, vector<32x128xbf16>
    %cst_35 = arith.constant dense<0.000000e+00> : vector<5x128xf32>
    %114 = tpu.matmul %112, %113, %cst_35 {dimension_numbers = #tpu.dot_dimension_numbers<[1], [0], [0], [1], [0, 0, 1, 1], [], []>} : vector<5x32xbf16>, vector<32x128xbf16>, vector<5x128xf32> -> vector<5x128xf32>
    %c0_36 = arith.constant 0 : index
    %c0_37 = arith.constant 0 : index
    %115 = vector.load %arg11[%c0_36, %c0_37] : memref<1x128xf32, #tpu.memory_space<vmem>>, vector<1x128xf32>
    %116 = vector.broadcast %115 : vector<1x128xf32> to vector<5x128xf32>
    %117 = arith.addf %114, %116 : vector<5x128xf32>
    %cst_38 = arith.constant 5.000000e-01 : f32
    %118 = vector.broadcast %cst_38 : f32 to vector<5x128xf32>
    %119 = arith.mulf %118, %117 : vector<5x128xf32>
    %cst_39 = arith.constant 4.471500e-02 : f32
    %120 = vector.broadcast %cst_39 : f32 to vector<5x128xf32>
    %121 = arith.mulf %120, %117 : vector<5x128xf32>
    %122 = arith.mulf %121, %117 : vector<5x128xf32>
    %123 = arith.mulf %122, %117 : vector<5x128xf32>
    %124 = arith.addf %117, %123 : vector<5x128xf32>
    %cst_40 = arith.constant 0.797884583 : f32
    %125 = vector.broadcast %cst_40 : f32 to vector<5x128xf32>
    %126 = arith.mulf %125, %124 : vector<5x128xf32>
    %127 = math.tanh %126 : vector<5x128xf32>
    %cst_41 = arith.constant 1.000000e+00 : f32
    %128 = vector.broadcast %cst_41 : f32 to vector<5x128xf32>
    %129 = arith.addf %128, %127 : vector<5x128xf32>
    %130 = arith.mulf %119, %129 : vector<5x128xf32>
    %131 = arith.truncf %130 : vector<5x128xf32> to vector<5x128xbf16>
    %c0_42 = arith.constant 0 : index
    %c0_43 = arith.constant 0 : index
    %132 = vector.load %arg12[%c0_42, %c0_43] : memref<128x32xbf16, #tpu.memory_space<vmem>>, vector<128x32xbf16>
    %cst_44 = arith.constant dense<0.000000e+00> : vector<5x32xf32>
    %133 = tpu.matmul %131, %132, %cst_44 {dimension_numbers = #tpu.dot_dimension_numbers<[1], [0], [0], [1], [0, 0, 1, 1], [], []>} : vector<5x128xbf16>, vector<128x32xbf16>, vector<5x32xf32> -> vector<5x32xf32>
    %c0_45 = arith.constant 0 : index
    %c0_46 = arith.constant 0 : index
    %134 = vector.load %arg13[%c0_45, %c0_46] : memref<1x32xf32, #tpu.memory_space<vmem>>, vector<1x32xf32>
    %135 = vector.broadcast %134 : vector<1x32xf32> to vector<5x32xf32>
    %136 = arith.addf %133, %135 : vector<5x32xf32>
    %137 = arith.addf %89, %136 : vector<5x32xf32>
    %138 = arith.truncf %137 : vector<5x32xf32> to vector<5x32xbf16>
    %c0_47 = arith.constant 0 : index
    %c0_48 = arith.constant 0 : index
    %c0_49 = arith.constant 0 : index
    %139 = vector.load %arg14[%c0_47, %c0_48, %c0_49] : memref<1x5x32xbf16, #tpu.memory_space<vmem>>, vector<1x5x32xbf16>
    %140 = vector.shape_cast %139 : vector<1x5x32xbf16> to vector<5x32xbf16>
    %141 = vector.shape_cast %138 : vector<5x32xbf16> to vector<1x5x32xbf16>
    tpu.vector_store %arg14[%c0_47, %c0_48, %c0_49], %141 {strides = array<i32>} : memref<1x5x32xbf16, #tpu.memory_space<vmem>>, vector<1x5x32xbf16>,
    return
  }
  func.func @transform_0(%arg0: i32) -> (i32, i32, i32) {
    %c0_i32 = arith.constant 0 : i32
    %c0_i32_0 = arith.constant 0 : i32
    %c0_i32_1 = arith.constant 0 : i32
    return %arg0, %c0_i32, %c0_i32_0 : i32, i32, i32
  }
  func.func @transform_1(%arg0: i32) -> (i32, i32) {
    %c0_i32 = arith.constant 0 : i32
    %c0_i32_0 = arith.constant 0 : i32
    %c0_i32_1 = arith.constant 0 : i32
    return %c0_i32, %c0_i32_0 : i32, i32
  }
  func.func @transform_2(%arg0: i32) -> (i32, i32) {
    %c0_i32 = arith.constant 0 : i32
    %c0_i32_0 = arith.constant 0 : i32
    %c0_i32_1 = arith.constant 0 : i32
    return %c0_i32, %c0_i32_0 : i32, i32
  }
  func.func @transform_3(%arg0: i32) -> (i32, i32) {
    %c0_i32 = arith.constant 0 : i32
    %c0_i32_0 = arith.constant 0 : i32
    %c0_i32_1 = arith.constant 0 : i32
    return %c0_i32, %c0_i32_0 : i32, i32
  }
  func.func @transform_4(%arg0: i32) -> (i32, i32) {
    %c0_i32 = arith.constant 0 : i32
    %c0_i32_0 = arith.constant 0 : i32
    %c0_i32_1 = arith.constant 0 : i32
    return %c0_i32, %c0_i32_0 : i32, i32
  }
  func.func @transform_5(%arg0: i32) -> (i32, i32) {
    %c0_i32 = arith.constant 0 : i32
    %c0_i32_0 = arith.constant 0 : i32
    %c0_i32_1 = arith.constant 0 : i32
    return %c0_i32, %c0_i32_0 : i32, i32
  }
  func.func @transform_6(%arg0: i32) -> (i32, i32) {
    %c0_i32 = arith.constant 0 : i32
    %c0_i32_0 = arith.constant 0 : i32
    %c0_i32_1 = arith.constant 0 : i32
    return %c0_i32, %c0_i32_0 : i32, i32
  }
  func.func @transform_7(%arg0: i32) -> (i32, i32) {
    %c0_i32 = arith.constant 0 : i32
    %c0_i32_0 = arith.constant 0 : i32
    %c0_i32_1 = arith.constant 0 : i32
    return %c0_i32, %c0_i32_0 : i32, i32
  }
  func.func @transform_8(%arg0: i32) -> (i32, i32) {
    %c0_i32 = arith.constant 0 : i32
    %c0_i32_0 = arith.constant 0 : i32
    %c0_i32_1 = arith.constant 0 : i32
    return %c0_i32, %c0_i32_0 : i32, i32
  }
  func.func @transform_9(%arg0: i32) -> (i32, i32) {
    %c0_i32 = arith.constant 0 : i32
    %c0_i32_0 = arith.constant 0 : i32
    %c0_i32_1 = arith.constant 0 : i32
    return %c0_i32, %c0_i32_0 : i32, i32
  }
  func.func @transform_10(%arg0: i32) -> (i32, i32) {
    %c0_i32 = arith.constant 0 : i32
    %c0_i32_0 = arith.constant 0 : i32
    %c0_i32_1 = arith.constant 0 : i32
    return %c0_i32, %c0_i32_0 : i32, i32
  }
  func.func @transform_11(%arg0: i32) -> (i32, i32) {
    %c0_i32 = arith.constant 0 : i32
    %c0_i32_0 = arith.constant 0 : i32
    %c0_i32_1 = arith.constant 0 : i32
    return %c0_i32, %c0_i32_0 : i32, i32
  }
  func.func @transform_12(%arg0: i32) -> (i32, i32) {
    %c0_i32 = arith.constant 0 : i32
    %c0_i32_0 = arith.constant 0 : i32
    %c0_i32_1 = arith.constant 0 : i32
    return %c0_i32, %c0_i32_0 : i32, i32
  }
  func.func @transform_13(%arg0: i32) -> (i32, i32, i32) {
    %c0_i32 = arith.constant 0 : i32
    %c0_i32_0 = arith.constant 0 : i32
    %c0_i32_1 = arith.constant 0 : i32
    return %arg0, %c0_i32, %c0_i32_0 : i32, i32, i32
  }
}

module attributes {stable_mosaic.version = 11 : i64} {
  func.func @_embed_kernel(%arg0: i32, %arg1: memref<1x4x256xf32, #tpu.memory_space<vmem>>, %arg2: memref<256x32xbf16, #tpu.memory_space<vmem>>, %arg3: memref<1x32xf32, #tpu.memory_space<vmem>>, %arg4: memref<4x32xf32, #tpu.memory_space<vmem>>, %arg5: memref<1x32xf32, #tpu.memory_space<vmem>>, %arg6: memref<1x5x32xbf16, #tpu.memory_space<vmem>>) attributes {dimension_semantics = [#tpu.dimension_semantics<parallel>], iteration_bounds = array<i64: 2>, scalar_prefetch = 0 : i64, scratch_operands = 0 : i64, tpu.core_type = #tpu.core_type<tc>, window_params = [{transform_indices = @transform_0, window_bounds = array<i64: 1, 4, 256>}, {pipeline_mode = #tpu.pipeline_mode<synchronous>, transform_indices = @transform_1, window_bounds = array<i64: 256, 32>}, {pipeline_mode = #tpu.pipeline_mode<synchronous>, transform_indices = @transform_2, window_bounds = array<i64: 1, 32>}, {pipeline_mode = #tpu.pipeline_mode<synchronous>, transform_indices = @transform_3, window_bounds = array<i64: 4, 32>}, {pipeline_mode = #tpu.pipeline_mode<synchronous>, transform_indices = @transform_4, window_bounds = array<i64: 1, 32>}, {transform_indices = @transform_5, window_bounds = array<i64: 1, 5, 32>}]} {
    %c0 = arith.constant 0 : index
    %c0_0 = arith.constant 0 : index
    %c0_1 = arith.constant 0 : index
    %0 = vector.load %arg1[%c0, %c0_0, %c0_1] : memref<1x4x256xf32, #tpu.memory_space<vmem>>, vector<1x4x256xf32>
    %1 = vector.shape_cast %0 : vector<1x4x256xf32> to vector<4x256xf32>
    %2 = arith.truncf %1 : vector<4x256xf32> to vector<4x256xbf16>
    %c0_2 = arith.constant 0 : index
    %c0_3 = arith.constant 0 : index
    %3 = vector.load %arg2[%c0_2, %c0_3] : memref<256x32xbf16, #tpu.memory_space<vmem>>, vector<256x32xbf16>
    %cst = arith.constant dense<0.000000e+00> : vector<4x32xf32>
    %4 = tpu.matmul %2, %3, %cst {dimension_numbers = #tpu.dot_dimension_numbers<[1], [0], [0], [1], [0, 0, 1, 1], [], []>} : vector<4x256xbf16>, vector<256x32xbf16>, vector<4x32xf32> -> vector<4x32xf32>
    %c0_4 = arith.constant 0 : index
    %c0_5 = arith.constant 0 : index
    %5 = vector.load %arg3[%c0_4, %c0_5] : memref<1x32xf32, #tpu.memory_space<vmem>>, vector<1x32xf32>
    %6 = vector.broadcast %5 : vector<1x32xf32> to vector<4x32xf32>
    %7 = arith.addf %4, %6 : vector<4x32xf32>
    %c0_6 = arith.constant 0 : index
    %c0_7 = arith.constant 0 : index
    %8 = vector.load %arg4[%c0_6, %c0_7] : memref<4x32xf32, #tpu.memory_space<vmem>>, vector<4x32xf32>
    %9 = arith.addf %7, %8 : vector<4x32xf32>
    %c0_8 = arith.constant 0 : index
    %c0_9 = arith.constant 0 : index
    %10 = vector.load %arg5[%c0_8, %c0_9] : memref<1x32xf32, #tpu.memory_space<vmem>>, vector<1x32xf32>
    %11 = tpu.concatenate %10, %9 in 0 : vector<1x32xf32>, vector<4x32xf32> -> vector<5x32xf32>
    %12 = arith.truncf %11 : vector<5x32xf32> to vector<5x32xbf16>
    %c0_10 = arith.constant 0 : index
    %c0_11 = arith.constant 0 : index
    %c0_12 = arith.constant 0 : index
    %13 = vector.load %arg6[%c0_10, %c0_11, %c0_12] : memref<1x5x32xbf16, #tpu.memory_space<vmem>>, vector<1x5x32xbf16>
    %14 = vector.shape_cast %13 : vector<1x5x32xbf16> to vector<5x32xbf16>
    %15 = vector.shape_cast %12 : vector<5x32xbf16> to vector<1x5x32xbf16>
    tpu.vector_store %arg6[%c0_10, %c0_11, %c0_12], %15 {strides = array<i32>} : memref<1x5x32xbf16, #tpu.memory_space<vmem>>, vector<1x5x32xbf16>,
    return
  }
  func.func @transform_0(%arg0: i32) -> (i32, i32, i32) {
    %c0_i32 = arith.constant 0 : i32
    %c0_i32_0 = arith.constant 0 : i32
    %c0_i32_1 = arith.constant 0 : i32
    return %arg0, %c0_i32, %c0_i32_0 : i32, i32, i32
  }
  func.func @transform_1(%arg0: i32) -> (i32, i32) {
    %c0_i32 = arith.constant 0 : i32
    %c0_i32_0 = arith.constant 0 : i32
    %c0_i32_1 = arith.constant 0 : i32
    return %c0_i32, %c0_i32_0 : i32, i32
  }
  func.func @transform_2(%arg0: i32) -> (i32, i32) {
    %c0_i32 = arith.constant 0 : i32
    %c0_i32_0 = arith.constant 0 : i32
    %c0_i32_1 = arith.constant 0 : i32
    return %c0_i32, %c0_i32_0 : i32, i32
  }
  func.func @transform_3(%arg0: i32) -> (i32, i32) {
    %c0_i32 = arith.constant 0 : i32
    %c0_i32_0 = arith.constant 0 : i32
    %c0_i32_1 = arith.constant 0 : i32
    return %c0_i32, %c0_i32_0 : i32, i32
  }
  func.func @transform_4(%arg0: i32) -> (i32, i32) {
    %c0_i32 = arith.constant 0 : i32
    %c0_i32_0 = arith.constant 0 : i32
    %c0_i32_1 = arith.constant 0 : i32
    return %c0_i32, %c0_i32_0 : i32, i32
  }
  func.func @transform_5(%arg0: i32) -> (i32, i32, i32) {
    %c0_i32 = arith.constant 0 : i32
    %c0_i32_0 = arith.constant 0 : i32
    %c0_i32_1 = arith.constant 0 : i32
    return %arg0, %c0_i32, %c0_i32_0 : i32, i32, i32
  }
}

</mosaic_0001>

<bundles_post_ra>
// kernel: vit_encoder_forward.3
= control target key start
LH: loop header
LB: loop body
LE: loop exit
PB: predicated region body
PF: predicated region fallthrough
CT: control target
= control target key end

     0   :  { %s586_s18 = smov 0   ;;  %s664_s0 = inlined_call_operand.vmem [shape: f32[2,4,256], index: 0, kind: input, shape index: {}]   ;;  %s665_s1 = inlined_call_operand.vmem [shape: bf16[256,32], index: 1, kind: input, shape index: {}]   ;;  %s666_s2 = inlined_call_operand.vmem [shape: f32[1,32], index: 2, kind: input, shape index: {}]   ;;  %s667_s3 = inlined_call_operand.vmem [shape: f32[4,32], index: 3, kind: input, shape index: {}]   ;;  %s668_s4 = inlined_call_operand.vmem [shape: f32[1,32], index: 4, kind: input, shape index: {}]   ;;  %s669_s5 = inlined_call_operand.vmem [shape: bf16[2,5,32], index: 5, kind: output, shape index: {}]  }
   0x1 LB: > { %s473_s19 = sadd.s32 4294967295, %s554_s18   ;;  %p477_p0 = scmp.ge.s32.totalorder %s554_s18, 1  ;;  %s554_s18 = sphi %s586_s18, %s15_s18  }
   0x2   : > { %p187_p1 = scmp.lt.s32.totalorder %s554_s18, 3 }
   0x4   : > { %p188_p2 = pnand %p477_p0, %p187_p1 }
   0x5   : > { %v531_v0 = vld [vmem:[%s665_s1 + $0x40] sm:$0xff] (!%p188_p2)   ;;  %v533_v2 = vld [vmem:[%s665_s1 + $0x48] sm:$0xff] (!%p188_p2)   ;;  %p214_p3 = scmp.lt.s32.totalorder (!%p188_p2), %s473_s19, 1  ;;  %v535_v4 = vld [vmem:[%s665_s1 + $0x50] sm:$0xff] (!%p188_p2)   ;;  %vm411_vm0 = vcmask (!%p188_p2), 1040384   ;;  %vm414_vm1 = vcmask (!%p188_p2), 256000  }
   0x6   : > { %191 = sbr.rel (%p188_p2) target bundleno = 264 (0x108), region = 40  ;;  %v532_v1 = vld [vmem:[%s665_s1] sm:$0xff] (!%p188_p2)   ;;  %501 = vmatprep.subr.bf16.mxu0 (!%p188_p2), %v531_v0  ;;  %v534_v3 = vld [vmem:[%s665_s1 + $0x8] sm:$0xff] (!%p188_p2)   ;;  %v536_v5 = vld [vmem:[%s665_s1 + $0x10] sm:$0xff] (!%p188_p2)   ;;  %vm415_vm2 = vsmask.f32 (!%p188_p2), 2304 }
   0x7   : > { %502 = vmatpush3.bf16.msra.mxu0 (!%p188_p2), %v532_v1  ;;  %v537_v6 = vld [vmem:[%s665_s1 + $0x58] sm:$0xff] (!%p188_p2)   ;;  %v539_v8 = vld [vmem:[%s665_s1 + $0x60] sm:$0xff] (!%p188_p2)   ;;  %v541_v10 = vld [vmem:[%s665_s1 + $0x68] sm:$0xff] (!%p188_p2)  }
   0x8   : > { %503 = vmatprep.subr.bf16.mxu0 (!%p188_p2), %v533_v2  ;;  %v538_v7 = vld [vmem:[%s665_s1 + $0x18] sm:$0xff] (!%p188_p2)   ;;  %v540_v9 = vld [vmem:[%s665_s1 + $0x20] sm:$0xff] (!%p188_p2)   ;;  %v542_v13 = vld [vmem:[%s665_s1 + $0x28] sm:$0xff] (!%p188_p2)  }
   0x9   : > { %v543_v15 = vld [vmem:[%s665_s1 + $0x70] sm:$0xff] (!%p188_p2)   ;;  %v545_v17 = vld [vmem:[%s665_s1 + $0x78] sm:$0xff] (!%p188_p2)   ;;  %v481_v21 = vld [vmem:[%s666_s2] ss:$0 sm:$0xff] (!%p188_p2) }
   0xa   : > { %v544_v16 = vld [vmem:[%s665_s1 + $0x30] sm:$0xff] (!%p188_p2)   ;;  %v546_v18 = vld [vmem:[%s665_s1 + $0x38] sm:$0xff] (!%p188_p2)   ;;  %v405_v25 = vld [vmem:[%s667_s3] sm:$0xf] (!%p188_p2) }
   0xb   : > { %504 = vmatpush3.bf16.msra.mxu0 (!%p188_p2), %v534_v3  ;;  %v407_v29 = vld [vmem:[%s668_s4] sm:$0x1] (!%p188_p2)  ;;  %vm416_vm3 = vmand (!%p188_p2), %vm414_vm1, %vm415_vm2 }
   0xc   : > { %505 = vmatprep.subr.bf16.mxu0 (!%p188_p2), %v535_v4 }
   0xd   : > { %s671_s19 = smov (!%p214_p3, %s473_s19), 1 }
   0xe   : > { %s500_s9 = sshll.u32 %s671_s19, 3  ;;  %s480_s12 = sshll.u32 %s671_s19, 2 }
   0xf   : > { %506 = vmatpush3.bf16.msra.mxu0 %v536_v5  ;;  %s218_s16 = scalar_lea.vmem %s664_s0, %s500_s9  ;;  %s222_s15 = scalar_lea.vmem %s669_s5, %s480_s12 }
  0x10   : > { %507 = vmatprep.subr.bf16.mxu0 %v537_v6  ;;  %v224_v11 = vld [vmem:[%s218_s16] sm:$0xff] }
  0x11   : > { %v226_v12 = vcombine.high %v224_v11, %v224_v11  ;;  %v228_v19 = vpack.c.bf16 %v224_v11, %v224_v11  ;;  %v417_v31 = vld [vmem:[%s222_s15] sm:$0x7] }
  0x13   : > { %508 = vmatpush3.bf16.msra.mxu0 %v538_v7  ;;  %v229_v14 = vpack.c.bf16 %v226_v12, %v226_v12 }
  0x14   : > { %509 = vmatprep.subr.bf16.mxu0 %v539_v8 }
  0x15   : > { %397 = vmatprep.mubr.bf16.mxu0 %v229_v14 }
  0x17   : > { %510 = vmatpush3.bf16.msra.mxu0 %v540_v9 }
  0x18   : > { %511 = vmatprep.subr.bf16.mxu0 %v541_v10 }
  0x1b   : > { %512 = vmatpush3.bf16.msra.mxu0 %v542_v13 }
  0x1c   : > { %513 = vmatprep.subr.bf16.mxu0 %v543_v15 }
  0x1f   : > { %514 = vmatpush3.bf16.msra.mxu0 %v544_v16 }
  0x20   : > { %515 = vmatprep.subr.bf16.mxu0 %v545_v17 }
  0x23   : > { %516 = vmatpush3.bf16.msra.mxu0 %v546_v18 }
  0x26   : > { %398 = vmatmul.mubr.bf16.vlgmr.msra.gmra.mrb[0].mxu0 %v228_v19 }
  0xf9   : > { %v517_v20 = vpop.f32.mrb[0].mxu0 }
  0xfa   : > { %v518_v22 = vpop.f32.mrb[1].mxu0 }
  0xfb   : > { %v519_v23 = vadd.f32 %v518_v22, %v517_v20  ;;  %v520_v24 = vpop.f32.mrb[2].mxu0 }
  0xfc   : > { %v521_v26 = vpop.f32.mrb[3].mxu0 }
  0xfd   : > { %v400_v27 = vadd.f32 %v519_v23, %v481_v21 }
  0xff   : > { %v406_v28 = vadd.f32 %v405_v25, %v400_v27 }
 0x101   : > { %v409_v30 = vrot.slane %v406_v28, 7 }
 0x103   : > { %v412_v32 = vsel %vm411_vm0, %v407_v29, %v409_v30 }
 0x104   : > { %v413_v33 = vpack.c.bf16 %v412_v32, %v412_v32 }
 0x106   : > { %v418_v34 = vsel %vm416_vm3, %v413_v33, %v417_v31 }
 0x107   : > { %419 = vst [vmem:[%s222_s15] sm:$0x7] %v418_v34 }
 0x108 PF: > { %s15_s18 = sadd.s32 1, %s554_s18  }
 0x109   : > { %p12_p4 = scmp.ge.s32.totalorder %s15_s18, 4  }
 0x10b   :  { %14 = sbr.rel (!%p12_p4) target bundleno = 1 (0x1), region = 70 }

// kernel: vit_encoder_forward.4
= control target key start
LH: loop header
LB: loop body
LE: loop exit
PB: predicated region body
PF: predicated region fallthrough
CT: control target
= control target key end

     0   :  { %s1661_s25 = smov 0   ;;  %s1862_s0 = inlined_call_operand.vmem [shape: bf16[2,5,32], index: 0, kind: input, shape index: {}, may-alias: {0,13}]   ;;  %s1863_s1 = inlined_call_operand.vmem [shape: f32[1,32], index: 1, kind: input, shape index: {}]   ;;  %s1864_s2 = inlined_call_operand.vmem [shape: f32[1,32], index: 2, kind: input, shape index: {}]   ;;  %s1865_s3 = inlined_call_operand.vmem [shape: bf16[32,96], index: 3, kind: input, shape index: {}]   ;;  %s1866_s4 = inlined_call_operand.vmem [shape: f32[1,96], index: 4, kind: input, shape index: {}]   ;;  %s1867_s5 = inlined_call_operand.vmem [shape: bf16[32,32], index: 5, kind: input, shape index: {}]   ;;  %s1868_s6 = inlined_call_operand.vmem [shape: f32[1,32], index: 6, kind: input, shape index: {}]   ;;  %s1869_s7 = inlined_call_operand.vmem [shape: f32[1,32], index: 7, kind: input, shape index: {}]   ;;  %s1870_s8 = inlined_call_operand.vmem [shape: f32[1,32], index: 8, kind: input, shape index: {}]   ;;  %s1871_s9 = inlined_call_operand.vmem [shape: bf16[32,128], index: 9, kind: input, shape index: {}]   ;;  %s1872_s10 = inlined_call_operand.vmem [shape: f32[1,128], index: 10, kind: input, shape index: {}]   ;;  %s1873_s11 = inlined_call_operand.vmem [shape: bf16[128,32], index: 11, kind: input, shape index: {}]   ;;  %s1874_s12 = inlined_call_operand.vmem [shape: f32[1,32], index: 12, kind: input, shape index: {}]   ;;  %s1875_s13 = inlined_call_operand.vmem [shape: bf16[2,5,32], index: 13, kind: output, shape index: {}, may-alias: {0,13}]  }
   0x1 LB: > { %s1349_s26 = sadd.s32 4294967295, %s1578_s25   ;;  %p1353_p0 = scmp.ge.s32.totalorder %s1578_s25, 1  ;;  %s1578_s25 = sphi %s1661_s25, %s23_s25  }
   0x2   : > { %p386_p1 = scmp.lt.s32.totalorder %s1578_s25, 3 }
   0x4   : > { %p387_p2 = pnand %p1353_p0, %p386_p1 }
   0x5   : > { %p428_p3 = scmp.lt.s32.totalorder (!%p387_p2), %s1349_s26, 1  ;;  %vm441_vm0 = vcmask (!%p387_p2), 258048   ;;  %v1536_v8 = vld [vmem:[%s1865_s3] sm:$0xff] (!%p387_p2)   ;;  %v1580_v9 = vmov (!%p387_p2), 0.0   ;;  %vm1581_vm1 = vmmov (!%p387_p2), 0   ;;  %v1537_v10 = vld [vmem:[%s1865_s3 + $0x8] sm:$0xff] (!%p387_p2)  }
   0x6   : > { %390 = sbr.rel (%p387_p2) target bundleno = 2648 (0xa58), region = 72  ;;  %1425 = vmatprep.subr.bf16.mxu0 (!%p387_p2), %v1580_v9  ;;  %1429 = vmatprep.mubr.msk.bf16.mxu0 (!%p387_p2), %vm1581_vm1, %v1580_v9  ;;  %v1356_v15 = vld [vmem:[%s1863_s1] ss:$0 sm:$0xff] (!%p387_p2)  ;;  %vm494_vm2 = vcmask (!%p387_p2), 261120   ;;  %s1582_s24 = smov (!%p387_p2), 104   ;;  %vm548_vm3 = vcmask (!%p387_p2), 64512  }
   0x7   : > { %1426 = vmatpush3.bf16.msra.mxu0 (!%p387_p2), %v1536_v8  ;;  %1445 = vmatprep.subr.bf16.mxu1 (!%p387_p2), %v1580_v9  ;;  %v1357_v17 = vld [vmem:[%s1864_s2] ss:$0 sm:$0xff] (!%p387_p2)  ;;  %s1583_s28 = smov (!%p387_p2), 120   ;;  %s1584_s29 = smov (!%p387_p2), 112   ;;  %vm739_vm4 = vcmask (!%p387_p2), 36864   ;;  %vm794_vm5 = vcmask (!%p387_p2), 1041408  }
   0x8   : > { %1427 = vmatprep.subr.bf16.mxu0 (!%p387_p2), %v1580_v9  ;;  %1447 = vmatprep.mubr.msk.bf16.mxu1 (!%p387_p2), %vm1581_vm1, %v1580_v9  ;;  %v1358_v21 = vld [vmem:[%s1866_s4] ss:$0 sm:$0xff] (!%p387_p2)  ;;  %s1586_s14 = smov (!%p387_p2), 64   ;;  %vm795_vm6 = vcmask (!%p387_p2), 1042432   ;;  %vm790_vm7 = vcmask (!%p387_p2), 39936   ;;  %s1588_s19 = smov (!%p387_p2), 8  }
   0x9   : > { %s1589_s20 = smov (!%p387_p2), 16   ;;  %s1590_s21 = smov (!%p387_p2), 24   ;;  %vm998_vm8 = vcmask (!%p387_p2), 130048   ;;  %vm1000_vm9 = vcmask (!%p387_p2), 195584   ;;  %vm1290_vm10 = vcmask (!%p387_p2), 256000  }
   0xa   : > { %vm1291_vm11 = vsmask.f32 (!%p387_p2), 2304 }
   0xb   : > { %1428 = vmatpush3.bf16.msra.mxu0 (!%p387_p2), %v1537_v10  ;;  %vm1292_vm12 = vmand (!%p387_p2), %vm1290_vm10, %vm1291_vm11 }
   0xc   : > { %1433 = vmatprep.subr.bf16.mxu0 (!%p387_p2), %v1580_v9 }
   0xd   : > { %s1877_s26 = smov (!%p428_p3, %s1349_s26), 1 }
   0xe   : > { %s1354_s27 = sshll.u32 %s1877_s26, 2 }
   0xf   : > { %s431_s30 = scalar_lea.vmem %s1862_s0, %s1354_s27 }
  0x10   : > { %v437_v0 = vld [vmem:[%s431_s30] sm:$0x7]  ;;  %s1585_s30 = smov 96  }
  0x11   : > { %v1677_v1 = vunpack.c.l.bf16 %v437_v0 }
  0x13   : > { %v442_v2 = vsel %vm441_vm0, %v1677_v1, 0.0 }
  0x14   : > { %443 = vadd.xlane.f32.xlu0 %v442_v2 }
  0xa1   : > { %v444_v3 = vpop.xlane.xlu0 %443 }
  0xa2   : > { %v446_v4 = vmul.f32 0.03125, %v444_v3 }
  0xa4   : > { %v447_v5 = vsub.f32 %v1677_v1, %v446_v4  ;;  %v1587_v4 = vmov 65535  }
  0xa6   : > { %v448_v6 = vmul.f32 %v447_v5, %v447_v5 }
  0xa8   : > { %v449_v7 = vsel %vm441_vm0, %v448_v6, 0.0 }
  0xa9   : > { %450 = vadd.xlane.f32.xlu0 %v449_v7 }
 0x136   : > { %v451_v11 = vpop.xlane.xlu0 %450 }
 0x137   : > { %v452_v12 = vmul.f32 0.03125, %v451_v11 }
 0x139   : > { %v453_v13 = vadd.f32 1e-05, %v452_v12 }
 0x13b   : > { %1550 = vrsqrt.f32 %v453_v13 }
 0x145   : > { %v1551_v14 = vpop.eup %1550 }
 0x146   : > { %v455_v16 = vmul.f32 %v1551_v14, %v447_v5  ;;  %v796_v5 = vsel %vm794_vm5, 4294967295, %v1587_v4 }
 0x147   : > { %v797_v8 = vsel %vm795_vm6, %v796_v5, 0 }
 0x148   : > { %v462_v18 = vmul.f32 %v1356_v15, %v455_v16 }
 0x14a   : > { %v469_v19 = vadd.f32 %v1357_v17, %v462_v18 }
 0x14c   : > { %v470_v20 = vpack.c.bf16 %v469_v19, %v469_v19 }
 0x14e   : > { %1430 = vmatmul.mubr.msk.bf16.vlgmr.msra.gmra.mrb[0].mxu0 %vm494_vm2, %v470_v20 }
 0x14f   : > { %1435 = vmatprep.mubr.msk.bf16.mxu0 %vm1581_vm1, %v1580_v9 }
 0x221   : > { %v532_v22 = vpop.f32.mrb[0].mxu0 }
 0x222   : > { %v533_v23 = vadd.f32 %v1358_v21, %v532_v22  ;;  %v1431_v24 = vpop.f32.mrb[1].mxu0 }
 0x223   : > { %v535_v25 = vpop.f32.mrb[2].mxu0 }
 0x224   : > { %v1709_v26 = vpack.c.bf16 %v533_v23, %v533_v23  ;;  %v1432_v27 = vpop.f32.mrb[3].mxu0 }
 0x226   : > { %544 = vrot.lane.b32.xlu0 %v1709_v26, %s1582_s24  ;;  %540 = vrot.lane.b32.xlu1 %v1709_v26, %s1583_s28 }
 0x22a   : > { %542 = vrot.lane.b32.xlu1 %v1709_v26, %s1584_s29  ;;  %s435_s29 = scalar_lea.vmem %s1875_s13, %s1354_s27 }
 0x22e   : > { %546 = vrot.lane.b32.xlu1 %v1709_v26, %s1585_s30 }
 0x298   : > { %v1715_v28 = vpop.permute.xlu1 %540  ;;  %v1721_v30 = vpop.permute.xlu0 %544 }
 0x299   : > { %595 = vrot.lane.b32.xlu1 %v1715_v28, %s1585_s30 }
 0x29c   : > { %v1718_v29 = vpop.permute.xlu1 %542 }
 0x29d   : > { %643 = vrot.lane.b32.xlu1 %v1718_v29, %s1585_s30 }
 0x2a0   : > { %v547_v31 = vpop.permute.xlu1 %546 }
 0x2a1   : > { %v553_v32 = vsel %vm548_vm3, %v547_v31, 0  ;;  %691 = vrot.lane.b32.xlu1 %v1721_v30, %s1585_s30 }
 0x2a2   : > { %1434 = vmatpush3.bf16.xpose.msra.mxu0 %v553_v32 }
 0x2a3   : > { %1439 = vmatprep.subr.bf16.mxu0 %v1580_v9 }
 0x2a9   : > { %1436 = vmatmul.mubr.msk.bf16.vlgmr.msra.gmra.mrb[4].mxu0 %vm548_vm3, %v1709_v26 }
 0x2aa   : > { %1441 = vmatprep.mubr.msk.bf16.mxu0 %vm1581_vm1, %v1580_v9 }
 0x30b   : > { %v596_v33 = vpop.permute.xlu1 %595 }
 0x30c   : > { %v601_v34 = vsel %vm548_vm3, %v596_v33, 0 }
 0x30d   : > { %1440 = vmatpush3.bf16.xpose.msra.mxu0 %v601_v34 }
 0x30e   : > { %1451 = vmatprep.subr.bf16.mxu0 %v1580_v9 }
 0x30f   : > { %v644_v35 = vpop.permute.xlu1 %643 }
 0x310   : > { %v649_v36 = vsel %vm548_vm3, %v644_v35, 0 }
 0x311   : > { %1446 = vmatpush3.bf16.xpose.msra.mxu1 %v649_v36 }
 0x312   : > { %1457 = vmatprep.subr.bf16.mxu1 %v1580_v9 }
 0x313   : > { %v692_v37 = vpop.permute.xlu1 %691 }
 0x314   : > { %v697_v38 = vsel %vm548_vm3, %v692_v37, 0  ;;  %1442 = vmatmul.mubr.msk.bf16.vlgmr.msra.gmra.mrb[8].mxu0 %vm548_vm3, %v1715_v28 }
 0x315   : > { %1452 = vmatpush3.bf16.xpose.msra.mxu0 %v697_v38  ;;  %1453 = vmatprep.mubr.msk.bf16.mxu0 %vm1581_vm1, %v1580_v9 }
 0x316   : > { %1463 = vmatprep.subr.bf16.mxu0 %v1580_v9 }
 0x318   : > { %1448 = vmatmul.mubr.msk.bf16.vlgmr.msra.gmra.mrb[0].mxu1 %vm548_vm3, %v1718_v29 }
 0x319   : > { %1459 = vmatprep.mubr.msk.bf16.mxu1 %vm1581_vm1, %v1580_v9 }
 0x31c   : > { %1454 = vmatmul.mubr.msk.bf16.vlgmr.msra.gmra.mrb[12].mxu0 %vm548_vm3, %v1721_v30 }
 0x31d   : > { %1465 = vmatprep.mubr.msk.bf16.mxu0 %vm1581_vm1, %v1580_v9 }
 0x37c   : > { %v589_v39 = vpop.f32.mrb[4].mxu0 }
 0x37d   : > { %v1437_v40 = vpop.f32.mrb[5].mxu0  ;;  %v740_v41 = vsel %vm739_vm4, %v589_v39, -inf }
 0x37e   : > { %741 = vmax.xlane.f32.xlu1 %v740_v41  ;;  %v592_v42 = vpop.f32.mrb[6].mxu0 }
 0x37f   : > { %v1438_v43 = vpop.f32.mrb[7].mxu0 }
 0x3e7   : > { %v637_v44 = vpop.f32.mrb[8].mxu0 }
 0x3e8   : > { %v1443_v45 = vpop.f32.mrb[9].mxu0  ;;  %v743_v46 = vsel %vm739_vm4, %v637_v44, -inf }
 0x3e9   : > { %744 = vmax.xlane.f32.xlu0 %v743_v46  ;;  %v640_v47 = vpop.f32.mrb[10].mxu0 }
 0x3ea   : > { %v1444_v48 = vpop.f32.mrb[11].mxu0 }
 0x3eb   : > { %v685_v49 = vpop.f32.mrb[0].mxu1  ;;  %v1538_v48 = vld [vmem:[%s1867_s5] sm:$0xff]  }
 0x3ec   : > { %v1449_v50 = vpop.f32.mrb[1].mxu1  ;;  %v746_v51 = vsel %vm739_vm4, %v685_v49, -inf }
 0x3ed   : > { %v688_v52 = vpop.f32.mrb[2].mxu1  ;;  %747 = vmax.xlane.f32.xlu1 %v746_v51 }
 0x3ee   : > { %v1450_v53 = vpop.f32.mrb[3].mxu1 }
 0x3ef   : > { %v733_v54 = vpop.f32.mrb[12].mxu0 }
 0x3f0   : > { %v1455_v55 = vpop.f32.mrb[13].mxu0  ;;  %v749_v56 = vsel %vm739_vm4, %v733_v54, -inf }
 0x3f1   : > { %750 = vmax.xlane.f32.xlu0 %v749_v56  ;;  %v736_v57 = vpop.f32.mrb[14].mxu0 }
 0x3f2   : > { %v1456_v58 = vpop.f32.mrb[15].mxu0 }
 0x3fe   : > { %788 = vrot.lane.b32.xlu1 %v1709_v26, %s1586_s14 }
 0x40b   : > { %v742_v59 = vpop.xlane.xlu1 %741 }
 0x40c   : > { %v752_v60 = vsub.f32 %v589_v39, %v742_v59 }
 0x40e   : > { %v756_v61 = vmul.f32 1.442695, %v752_v60 }
 0x410   : > { %1552 = vpow2.f32 %v756_v61 }
 0x41a   : > { %v1553_v62 = vpop.eup %1552 }
 0x41b   : > { %v764_v63 = vsel %vm739_vm4, %v1553_v62, 0.0 }
 0x422   : > { %765 = vadd.xlane.f32.xlu1 %v764_v63 }
 0x476   : > { %v745_v0 = vpop.xlane.xlu0 %744 }
 0x477   : > { %v753_v2 = vsub.f32 %v637_v44, %v745_v0 }
 0x479   : > { %v758_v3 = vmul.f32 1.442695, %v753_v2 }
 0x47a   : > { %v748_v6 = vpop.xlane.xlu1 %747 }
 0x47b   : > { %1554 = vpow2.f32 %v758_v3  ;;  %v754_v7 = vsub.f32 %v685_v49, %v748_v6  ;;  %v1539_v49 = vld [vmem:[%s1867_s5 + $0x8] sm:$0xff]  }
 0x47d   : > { %v760_v10 = vmul.f32 1.442695, %v754_v7  ;;  %v1373_v7 = vld [vmem:[%s1868_s6] ss:$0 sm:$0xff] }
 0x47e   : > { %v789_v11 = vpop.permute.xlu1 %788  ;;  %v751_v12 = vpop.xlane.xlu0 %750 }
 0x47f   : > { %1556 = vpow2.f32 %v760_v10  ;;  %v799_v13 = vand.u32 %v797_v8, %v789_v11  ;;  %v755_v14 = vsub.f32 %v733_v54, %v751_v12 }
 0x481   : > { %v762_v15 = vmul.f32 1.442695, %v755_v14  ;;  %1458 = vmatpush3.bf16.msra.mxu1 %v799_v13 }
 0x482   : > { %1469 = vmatprep.subr.bf16.mxu1 %v1580_v9 }
 0x483   : > { %1558 = vpow2.f32 %v762_v15 }
 0x485   : > { %v1555_v16 = vpop.eup %1554 }
 0x486   : > { %v767_v17 = vsel %vm739_vm4, %v1555_v16, 0.0 }
 0x487   : > { %768 = vadd.xlane.f32.xlu0 %v767_v17 }
 0x489   : > { %v1557_v18 = vpop.eup %1556 }
 0x48a   : > { %v770_v19 = vsel %vm739_vm4, %v1557_v18, 0.0 }
 0x48b   : > { %771 = vadd.xlane.f32.xlu1 %v770_v19 }
 0x48d   : > { %v1559_v20 = vpop.eup %1558 }
 0x48e   : > { %v773_v21 = vsel %vm739_vm4, %v1559_v20, 0.0 }
 0x48f   : > { %774 = vadd.xlane.f32.xlu0 %v773_v21  ;;  %v1542_v21 = vld [vmem:[%s1873_s11] sm:$0xff]  }
 0x49c   : > { %889 = vrot.lane.b32.xlu1 %v1718_v29, %s1586_s14 }
 0x4a0   : > { %937 = vrot.lane.b32.xlu1 %v1721_v30, %s1586_s14 }
 0x4a5   : > { %841 = vrot.lane.b32.xlu0 %v1715_v28, %s1586_s14 }
 0x4af   : > { %v766_v22 = vpop.xlane.xlu1 %765 }
 0x4b0   : > { %1560 = vrcp.f32 %v766_v22 }
 0x4ba   : > { %v1561_v23 = vpop.eup %1560 }
 0x4bb   : > { %v777_v24 = vmul.f32 %v1561_v23, %v1553_v62 }
 0x4bd   : > { %v784_v25 = vpack.c.bf16 %v777_v24, %v777_v24 }
 0x4bf   : > { %1460 = vmatmul.mubr.msk.bf16.vlgmr.msra.gmra.mrb[4].mxu1 %vm790_vm7, %v784_v25 }
 0x4c0   : > { %1471 = vmatprep.mubr.msk.bf16.mxu1 %vm1581_vm1, %v1580_v9 }
 0x514   : > { %v769_v26 = vpop.xlane.xlu0 %768 }
 0x515   : > { %1562 = vrcp.f32 %v769_v26  ;;  %v1374_v26 = vld [vmem:[%s1869_s7] ss:$0 sm:$0xff] }
 0x518   : > { %v772_v27 = vpop.xlane.xlu1 %771 }
 0x519   : > { %1564 = vrcp.f32 %v772_v27 }
 0x51c   : > { %v890_v29 = vpop.permute.xlu1 %889  ;;  %v775_v30 = vpop.xlane.xlu0 %774 }
 0x51d   : > { %v895_v31 = vand.u32 %v890_v29, %v797_v8  ;;  %1566 = vrcp.f32 %v775_v30  ;;  %v1375_v29 = vld [vmem:[%s1870_s8] ss:$0 sm:$0xff] }
 0x51f   : > { %v1563_v28 = vpop.eup %1562  ;;  %1470 = vmatpush3.bf16.msra.mxu1 %v895_v31 }
 0x520   : > { %v779_v32 = vmul.f32 %v1563_v28, %v1555_v16  ;;  %v842_v33 = vpop.permute.xlu0 %841  ;;  %1481 = vmatprep.subr.bf16.mxu1 %v1580_v9  ;;  %v938_v35 = vpop.permute.xlu1 %937 }
 0x521   : > { %v847_v34 = vand.u32 %v842_v33, %v797_v8  ;;  %v943_v39 = vand.u32 %v938_v35, %v797_v8  ;;  %v1544_v33 = vld [vmem:[%s1873_s11 + $0x10] sm:$0xff]   ;;  %v1546_v35 = vld [vmem:[%s1873_s11 + $0x20] sm:$0xff]  }
 0x522   : > { %v785_v38 = vpack.c.bf16 %v779_v32, %v779_v32  ;;  %v1543_v32 = vld [vmem:[%s1873_s11 + $0x8] sm:$0xff]  }
 0x523   : > { %v1565_v36 = vpop.eup %1564  ;;  %1464 = vmatpush3.bf16.msra.mxu0 %v847_v34  ;;  %v1545_v34 = vld [vmem:[%s1873_s11 + $0x18] sm:$0xff]  }
 0x524   : > { %v781_v37 = vmul.f32 %v1565_v36, %v1557_v18  ;;  %1475 = vmatprep.subr.bf16.mxu0 %v1580_v9  ;;  %v1547_v36 = vld [vmem:[%s1873_s11 + $0x28] sm:$0xff]  }
 0x526   : > { %1466 = vmatmul.mubr.msk.bf16.vlgmr.msra.gmra.mrb[16].mxu0 %vm790_vm7, %v785_v38  ;;  %v786_v40 = vpack.c.bf16 %v781_v37, %v781_v37  ;;  %v1548_v37 = vld [vmem:[%s1873_s11 + $0x30] sm:$0xff]   ;;  %v1549_v38 = vld [vmem:[%s1873_s11 + $0x38] sm:$0xff]  }
 0x527   : > { %v1567_v41 = vpop.eup %1566  ;;  %1476 = vmatpush3.bf16.msra.mxu0 %v943_v39  ;;  %1477 = vmatprep.mubr.msk.bf16.mxu0 %vm1581_vm1, %v1580_v9  ;;  %v1376_v39 = vld [vmem:[%s1872_s10] ss:$0 sm:$0xff] }
 0x528   : > { %v783_v42 = vmul.f32 %v1567_v41, %v1559_v20  ;;  %1472 = vmatmul.mubr.msk.bf16.vlgmr.msra.gmra.mrb[8].mxu1 %vm790_vm7, %v786_v40  ;;  %1489 = vmatprep.subr.bf16.mxu0 %v1580_v9  ;;  %v1541_v20 = vld [vmem:[%s1871_s9 + $0x8] sm:$0xff]  }
 0x529   : > { %1485 = vmatprep.mubr.msk.bf16.mxu1 %vm1581_vm1, %v1580_v9  ;;  %1482 = vmatpush3.bf16.msra.mxu1 %v1538_v48 }
 0x52a   : > { %v787_v43 = vpack.c.bf16 %v783_v42, %v783_v42  ;;  %1483 = vmatprep.subr.bf16.mxu1 %v1580_v9 }
 0x52d   : > { %1484 = vmatpush3.bf16.msra.mxu1 %v1539_v49 }
 0x52e   : > { %1478 = vmatmul.mubr.msk.bf16.vlgmr.msra.gmra.mrb[20].mxu0 %vm790_vm7, %v787_v43  ;;  %1497 = vmatprep.subr.bf16.mxu1 %v1580_v9 }
 0x52f   : > { %1493 = vmatprep.mubr.msk.bf16.mxu0 %vm1581_vm1, %v1580_v9 }
 0x592   : > { %v835_v44 = vpop.f32.mrb[4].mxu1 }
 0x593   : > { %v1461_v45 = vpop.f32.mrb[5].mxu1 }
 0x594   : > { %v838_v46 = vpop.f32.mrb[6].mxu1 }
 0x595   : > { %v1462_v47 = vpop.f32.mrb[7].mxu1 }
 0x5f9   : > { %v883_v50 = vpop.f32.mrb[16].mxu0 }
 0x5fa   : > { %986 = vrot.lane.b32.xlu0 %v883_v50, %s1588_s19  ;;  %v1467_v51 = vpop.f32.mrb[17].mxu0 }
 0x5fb   : > { %v886_v52 = vpop.f32.mrb[18].mxu0  ;;  %v931_v53 = vpop.f32.mrb[8].mxu1 }
 0x5fc   : > { %990 = vrot.lane.b32.xlu1 %v931_v53, %s1589_s20  ;;  %v1468_v54 = vpop.f32.mrb[19].mxu0  ;;  %v1473_v55 = vpop.f32.mrb[9].mxu1 }
 0x5fd   : > { %v934_v56 = vpop.f32.mrb[10].mxu1  ;;  %v1380_v54 = vld [vmem:[%s1874_s12] ss:$0 sm:$0xff] }
 0x5fe   : > { %v1474_v57 = vpop.f32.mrb[11].mxu1 }
 0x601   : > { %v979_v58 = vpop.f32.mrb[20].mxu0 }
 0x602   : > { %994 = vrot.lane.b32.xlu0 %v979_v58, %s1590_s21  ;;  %v1479_v59 = vpop.f32.mrb[21].mxu0 }
 0x603   : > { %v982_v60 = vpop.f32.mrb[22].mxu0 }
 0x604   : > { %v1480_v61 = vpop.f32.mrb[23].mxu0 }
 0x605   : > { %v1293_v61 = vld [vmem:[%s435_s29] sm:$0x7] }
 0x66c   : > { %v987_v62 = vpop.permute.xlu0 %986 }
 0x66d   : > { %v997_v63 = vsel %vm548_vm3, %v835_v44, %v987_v62 }
 0x66e   : > { %v991_v0 = vpop.permute.xlu1 %990 }
 0x66f   : > { %v999_v2 = vsel %vm998_vm8, %v997_v63, %v991_v0 }
 0x674   : > { %v995_v3 = vpop.permute.xlu0 %994 }
 0x675   : > { %v1001_v4 = vsel %vm1000_vm9, %v999_v2, %v995_v3 }
 0x676   : > { %v1002_v5 = vpack.c.bf16 %v1001_v4, %v1001_v4 }
 0x678   : > { %1486 = vmatmul.mubr.msk.bf16.vlgmr.msra.gmra.mrb[12].mxu1 %vm494_vm2, %v1002_v5 }
 0x679   : > { %1513 = vmatprep.mubr.msk.bf16.mxu1 %vm1581_vm1, %v1580_v9  ;;  %1498 = vmatpush3.bf16.msra.mxu1 %v1542_v21 }
 0x67a   : > { %1499 = vmatprep.subr.bf16.mxu1 %v1580_v9 }
 0x67d   : > { %1500 = vmatpush3.bf16.msra.mxu1 %v1543_v32 }
 0x67e   : > { %1501 = vmatprep.subr.bf16.mxu1 %v1580_v9 }
 0x681   : > { %1502 = vmatpush3.bf16.msra.mxu1 %v1544_v33 }
 0x682   : > { %1503 = vmatprep.subr.bf16.mxu1 %v1580_v9 }
 0x685   : > { %1504 = vmatpush3.bf16.msra.mxu1 %v1545_v34 }
 0x686   : > { %1505 = vmatprep.subr.bf16.mxu1 %v1580_v9 }
 0x689   : > { %1506 = vmatpush3.bf16.msra.mxu1 %v1546_v35 }
 0x68a   : > { %1507 = vmatprep.subr.bf16.mxu1 %v1580_v9 }
 0x68d   : > { %1508 = vmatpush3.bf16.msra.mxu1 %v1547_v36 }
 0x68e   : > { %1509 = vmatprep.subr.bf16.mxu1 %v1580_v9 }
 0x691   : > { %1510 = vmatpush3.bf16.msra.mxu1 %v1548_v37 }
 0x692   : > { %1511 = vmatprep.subr.bf16.mxu1 %v1580_v9 }
 0x695   : > { %1512 = vmatpush3.bf16.msra.mxu1 %v1549_v38 }
 0x74b   : > { %v1056_v6 = vpop.f32.mrb[12].mxu1 }
 0x74c   : > { %v1062_v8 = vadd.f32 %v1056_v6, %v1677_v1  ;;  %v1487_v10 = vpop.f32.mrb[13].mxu1  ;;  %v1540_v1 = vld [vmem:[%s1871_s9] sm:$0xff]  }
 0x74d   : > { %v1059_v11 = vpop.f32.mrb[14].mxu1  ;;  %1490 = vmatpush3.bf16.msra.mxu0 %v1540_v1 }
 0x74e   : > { %v1796_v12 = vadd.f32 %v1373_v7, %v1062_v8  ;;  %v1488_v13 = vpop.f32.mrb[15].mxu1  ;;  %1491 = vmatprep.subr.bf16.mxu0 %v1580_v9 }
 0x750   : > { %v1073_v14 = vsel %vm441_vm0, %v1796_v12, 0.0 }
 0x751   : > { %1074 = vadd.xlane.f32.xlu1 %v1073_v14  ;;  %1492 = vmatpush3.bf16.msra.mxu0 %v1541_v20 }
 0x7de   : > { %v1075_v15 = vpop.xlane.xlu1 %1074 }
 0x7df   : > { %v1076_v16 = vmul.f32 0.03125, %v1075_v15 }
 0x7e1   : > { %v1077_v17 = vsub.f32 %v1796_v12, %v1076_v16 }
 0x7e3   : > { %v1078_v18 = vmul.f32 %v1077_v17, %v1077_v17 }
 0x7e5   : > { %v1079_v19 = vsel %vm441_vm0, %v1078_v18, 0.0 }
 0x7e6   : > { %1080 = vadd.xlane.f32.xlu0 %v1079_v19 }
 0x873   : > { %v1081_v22 = vpop.xlane.xlu0 %1080 }
 0x874   : > { %v1082_v23 = vmul.f32 0.03125, %v1081_v22 }
 0x876   : > { %v1083_v24 = vadd.f32 1e-05, %v1082_v23 }
 0x878   : > { %1568 = vrsqrt.f32 %v1083_v24 }
 0x882   : > { %v1569_v25 = vpop.eup %1568 }
 0x883   : > { %v1085_v27 = vmul.f32 %v1569_v25, %v1077_v17 }
 0x885   : > { %v1092_v30 = vmul.f32 %v1374_v26, %v1085_v27 }
 0x887   : > { %v1099_v31 = vadd.f32 %v1375_v29, %v1092_v30 }
 0x889   : > { %v1100_v28 = vpack.c.bf16 %v1099_v31, %v1099_v31 }
 0x88b   : > { %1494 = vmatmul.mubr.msk.bf16.vlgmr.msra.gmra.mrb[24].mxu0 %vm494_vm2, %v1100_v28 }
 0x95e   : > { %v1161_v40 = vpop.f32.mrb[24].mxu0 }
 0x95f   : > { %v1162_v41 = vadd.f32 %v1376_v39, %v1161_v40  ;;  %v1495_v42 = vpop.f32.mrb[25].mxu0 }
 0x960   : > { %v1164_v43 = vpop.f32.mrb[26].mxu0 }
 0x961   : > { %v1168_v44 = vmul.f32 0.044715, %v1162_v41  ;;  %v1496_v45 = vpop.f32.mrb[27].mxu0  ;;  %v1167_v51 = vmul.f32 0.5, %v1162_v41 }
 0x963   : > { %v1169_v46 = vmul.f32 %v1168_v44, %v1162_v41 }
 0x965   : > { %v1170_v47 = vmul.f32 %v1169_v46, %v1162_v41 }
 0x967   : > { %v1171_v48 = vadd.f32 %v1170_v47, %v1162_v41 }
 0x969   : > { %v1172_v49 = vmul.f32 0.7978846, %v1171_v48 }
 0x96b   : > { %1570 = vtanh.f32 %v1172_v49 }
 0x975   : > { %v1571_v50 = vpop.eup %1570 }
 0x976   : > { %v1174_v9 = vadd.f32 1.0, %v1571_v50 }
 0x978   : > { %v1175_v52 = vmul.f32 %v1174_v9, %v1167_v51 }
 0x97a   : > { %v1176_v53 = vpack.c.bf16 %v1175_v52, %v1175_v52 }
 0x97c   : > { %1514 = vmatmul.mubr.bf16.vlgmr.msra.gmra.mrb[16].mxu1 %v1176_v53 }
 0xa4f   : > { %v1282_v55 = vpop.f32.mrb[16].mxu1 }
 0xa50   : > { %v1283_v56 = vadd.f32 %v1380_v54, %v1282_v55  ;;  %v1515_v57 = vpop.f32.mrb[17].mxu1 }
 0xa51   : > { %v1285_v58 = vpop.f32.mrb[18].mxu1 }
 0xa52   : > { %v1288_v59 = vadd.f32 %v1283_v56, %v1796_v12  ;;  %v1516_v60 = vpop.f32.mrb[19].mxu1 }
 0xa54   : > { %v1289_v62 = vpack.c.bf16 %v1288_v59, %v1288_v59 }
 0xa56   : > { %v1294_v63 = vsel %vm1292_vm12, %v1289_v62, %v1293_v61 }
 0xa57   : > { %1295 = vst [vmem:[%s435_s29] sm:$0x7] %v1294_v63 }
 0xa58 PF: > { %s23_s25 = sadd.s32 1, %s1578_s25  }
 0xa59   : > { %p20_p4 = scmp.ge.s32.totalorder %s23_s25, 4  }
 0xa5b   :  { %22 = sbr.rel (!%p20_p4) target bundleno = 1 (0x1), region = 102 }

// kernel: vit_encoder_forward.5
= control target key start
LH: loop header
LB: loop body
LE: loop exit
PB: predicated region body
PF: predicated region fallthrough
CT: control target
= control target key end

     0   :  { %s1752_s18 = smov 0   ;;  %s1959_s0 = inlined_call_operand.vmem [shape: bf16[2,5,32], index: 0, kind: input, shape index: {}]   ;;  %s1960_s1 = inlined_call_operand.vmem [shape: f32[1,32], index: 1, kind: input, shape index: {}]   ;;  %s1961_s2 = inlined_call_operand.vmem [shape: f32[1,32], index: 2, kind: input, shape index: {}]   ;;  %s1962_s3 = inlined_call_operand.vmem [shape: bf16[32,96], index: 3, kind: input, shape index: {}]   ;;  %s1963_s4 = inlined_call_operand.vmem [shape: f32[1,96], index: 4, kind: input, shape index: {}]   ;;  %s1964_s5 = inlined_call_operand.vmem [shape: bf16[32,32], index: 5, kind: input, shape index: {}]   ;;  %s1965_s6 = inlined_call_operand.vmem [shape: f32[1,32], index: 6, kind: input, shape index: {}]   ;;  %s1966_s7 = inlined_call_operand.vmem [shape: f32[1,32], index: 7, kind: input, shape index: {}]   ;;  %s1967_s8 = inlined_call_operand.vmem [shape: f32[1,32], index: 8, kind: input, shape index: {}]   ;;  %s1968_s9 = inlined_call_operand.vmem [shape: bf16[32,128], index: 9, kind: input, shape index: {}]   ;;  %s1969_s10 = inlined_call_operand.vmem [shape: f32[1,128], index: 10, kind: input, shape index: {}]   ;;  %s1970_s11 = inlined_call_operand.vmem [shape: bf16[128,32], index: 11, kind: input, shape index: {}]   ;;  %s1971_s12 = inlined_call_operand.vmem [shape: f32[1,32], index: 12, kind: input, shape index: {}]   ;;  %s1972_s13 = inlined_call_operand.vmem [shape: f32[1,32], index: 13, kind: input, shape index: {}]   ;;  %s1973_s14 = inlined_call_operand.vmem [shape: f32[1,32], index: 14, kind: input, shape index: {}]   ;;  %s1974_s15 = inlined_call_operand.vmem [shape: f32[2,5,32], index: 15, kind: output, shape index: {}]  }
   0x1 LB: > { %s1426_s19 = sadd.s32 4294967295, %s1659_s18   ;;  %p1430_p0 = scmp.ge.s32.totalorder %s1659_s18, 1  ;;  %s1659_s18 = sphi %s1752_s18, %s25_s18  }
   0x2   : > { %p436_p1 = scmp.lt.s32.totalorder %s1659_s18, 3 }
   0x4   : > { %p437_p2 = pnand %p1430_p0, %p436_p1 }
   0x5   : > { %p482_p3 = scmp.lt.s32.totalorder (!%p437_p2), %s1426_s19, 1  ;;  %vm495_vm0 = vcmask (!%p437_p2), 258048   ;;  %v1615_v8 = vld [vmem:[%s1962_s3] sm:$0xff] (!%p437_p2)   ;;  %v1661_v9 = vmov (!%p437_p2), 0.0   ;;  %vm1662_vm1 = vmmov (!%p437_p2), 0   ;;  %v1616_v10 = vld [vmem:[%s1962_s3 + $0x8] sm:$0xff] (!%p437_p2)  }
   0x6   : > { %440 = sbr.rel (%p437_p2) target bundleno = 2958 (0xb8e), region = 80  ;;  %1504 = vmatprep.subr.bf16.mxu0 (!%p437_p2), %v1661_v9  ;;  %1508 = vmatprep.mubr.msk.bf16.mxu0 (!%p437_p2), %vm1662_vm1, %v1661_v9  ;;  %v1433_v15 = vld [vmem:[%s1960_s1] ss:$0 sm:$0xff] (!%p437_p2)  ;;  %vm548_vm2 = vcmask (!%p437_p2), 261120   ;;  %s1663_s21 = smov (!%p437_p2), 104   ;;  %vm602_vm3 = vcmask (!%p437_p2), 64512  }
   0x7   : > { %1505 = vmatpush3.bf16.msra.mxu0 (!%p437_p2), %v1615_v8  ;;  %1524 = vmatprep.subr.bf16.mxu1 (!%p437_p2), %v1661_v9  ;;  %v1434_v17 = vld [vmem:[%s1961_s2] ss:$0 sm:$0xff] (!%p437_p2)  ;;  %s1664_s22 = smov (!%p437_p2), 120   ;;  %s1666_s24 = smov (!%p437_p2), 96   ;;  %vm793_vm4 = vcmask (!%p437_p2), 36864   ;;  %vm848_vm5 = vcmask (!%p437_p2), 1041408  }
   0x8   : > { %1506 = vmatprep.subr.bf16.mxu0 (!%p437_p2), %v1661_v9  ;;  %1526 = vmatprep.mubr.msk.bf16.mxu1 (!%p437_p2), %vm1662_vm1, %v1661_v9  ;;  %v1435_v21 = vld [vmem:[%s1963_s4] ss:$0 sm:$0xff] (!%p437_p2)  ;;  %s1667_s25 = smov (!%p437_p2), 64   ;;  %vm849_vm6 = vcmask (!%p437_p2), 1042432   ;;  %vm844_vm7 = vcmask (!%p437_p2), 39936   ;;  %s1669_s30 = smov (!%p437_p2), 8  }
   0x9   : > { %s1670_s16 = smov (!%p437_p2), 16   ;;  %s1671_s17 = smov (!%p437_p2), 24   ;;  %vm1052_vm8 = vcmask (!%p437_p2), 130048   ;;  %vm1054_vm9 = vcmask (!%p437_p2), 195584  }
   0xb   : > { %1507 = vmatpush3.bf16.msra.mxu0 (!%p437_p2), %v1616_v10 }
   0xc   : > { %1512 = vmatprep.subr.bf16.mxu0 (!%p437_p2), %v1661_v9 }
   0xd   : > { %s1976_s19 = smov (!%p482_p3, %s1426_s19), 1 }
   0xe   : > { %s1431_s20 = sshll.u32 %s1976_s19, 2  ;;  %s1432_s26 = sshll.u32 %s1976_s19, 3 }
   0xf   : > { %s485_s23 = scalar_lea.vmem %s1959_s0, %s1431_s20 }
  0x10   : > { %v491_v0 = vld [vmem:[%s485_s23] sm:$0x7]  ;;  %s1665_s23 = smov 112  }
  0x11   : > { %v1766_v1 = vunpack.c.l.bf16 %v491_v0 }
  0x13   : > { %v496_v2 = vsel %vm495_vm0, %v1766_v1, 0.0 }
  0x14   : > { %497 = vadd.xlane.f32.xlu0 %v496_v2 }
  0xa1   : > { %v498_v3 = vpop.xlane.xlu0 %497 }
  0xa2   : > { %v500_v4 = vmul.f32 0.03125, %v498_v3 }
  0xa4   : > { %v501_v5 = vsub.f32 %v1766_v1, %v500_v4  ;;  %v1668_v4 = vmov 65535  }
  0xa6   : > { %v502_v6 = vmul.f32 %v501_v5, %v501_v5 }
  0xa8   : > { %v503_v7 = vsel %vm495_vm0, %v502_v6, 0.0 }
  0xa9   : > { %504 = vadd.xlane.f32.xlu0 %v503_v7 }
 0x136   : > { %v505_v11 = vpop.xlane.xlu0 %504 }
 0x137   : > { %v506_v12 = vmul.f32 0.03125, %v505_v11 }
 0x139   : > { %v507_v13 = vadd.f32 1e-05, %v506_v12 }
 0x13b   : > { %1629 = vrsqrt.f32 %v507_v13 }
 0x145   : > { %v1630_v14 = vpop.eup %1629 }
 0x146   : > { %v509_v16 = vmul.f32 %v1630_v14, %v501_v5  ;;  %v850_v5 = vsel %vm848_vm5, 4294967295, %v1668_v4 }
 0x147   : > { %v851_v8 = vsel %vm849_vm6, %v850_v5, 0 }
 0x148   : > { %v516_v18 = vmul.f32 %v1433_v15, %v509_v16 }
 0x14a   : > { %v523_v19 = vadd.f32 %v1434_v17, %v516_v18 }
 0x14c   : > { %v524_v20 = vpack.c.bf16 %v523_v19, %v523_v19 }
 0x14e   : > { %1509 = vmatmul.mubr.msk.bf16.vlgmr.msra.gmra.mrb[0].mxu0 %vm548_vm2, %v524_v20 }
 0x14f   : > { %1514 = vmatprep.mubr.msk.bf16.mxu0 %vm1662_vm1, %v1661_v9 }
 0x221   : > { %v586_v22 = vpop.f32.mrb[0].mxu0 }
 0x222   : > { %v587_v23 = vadd.f32 %v1435_v21, %v586_v22  ;;  %v1510_v24 = vpop.f32.mrb[1].mxu0 }
 0x223   : > { %v589_v25 = vpop.f32.mrb[2].mxu0 }
 0x224   : > { %v1798_v26 = vpack.c.bf16 %v587_v23, %v587_v23  ;;  %v1511_v27 = vpop.f32.mrb[3].mxu0 }
 0x226   : > { %598 = vrot.lane.b32.xlu0 %v1798_v26, %s1663_s21  ;;  %594 = vrot.lane.b32.xlu1 %v1798_v26, %s1664_s22 }
 0x22a   : > { %596 = vrot.lane.b32.xlu1 %v1798_v26, %s1665_s23 }
 0x22e   : > { %600 = vrot.lane.b32.xlu1 %v1798_v26, %s1666_s24 }
 0x298   : > { %v1804_v28 = vpop.permute.xlu1 %594  ;;  %v1810_v30 = vpop.permute.xlu0 %598 }
 0x299   : > { %649 = vrot.lane.b32.xlu1 %v1804_v28, %s1666_s24 }
 0x29c   : > { %v1807_v29 = vpop.permute.xlu1 %596 }
 0x29d   : > { %697 = vrot.lane.b32.xlu1 %v1807_v29, %s1666_s24 }
 0x2a0   : > { %v601_v31 = vpop.permute.xlu1 %600 }
 0x2a1   : > { %v607_v32 = vsel %vm602_vm3, %v601_v31, 0  ;;  %745 = vrot.lane.b32.xlu1 %v1810_v30, %s1666_s24 }
 0x2a2   : > { %1513 = vmatpush3.bf16.xpose.msra.mxu0 %v607_v32 }
 0x2a3   : > { %1518 = vmatprep.subr.bf16.mxu0 %v1661_v9 }
 0x2a9   : > { %1515 = vmatmul.mubr.msk.bf16.vlgmr.msra.gmra.mrb[4].mxu0 %vm602_vm3, %v1798_v26 }
 0x2aa   : > { %1520 = vmatprep.mubr.msk.bf16.mxu0 %vm1662_vm1, %v1661_v9 }
 0x30b   : > { %v650_v33 = vpop.permute.xlu1 %649 }
 0x30c   : > { %v655_v34 = vsel %vm602_vm3, %v650_v33, 0 }
 0x30d   : > { %1519 = vmatpush3.bf16.xpose.msra.mxu0 %v655_v34 }
 0x30e   : > { %1530 = vmatprep.subr.bf16.mxu0 %v1661_v9 }
 0x30f   : > { %v698_v35 = vpop.permute.xlu1 %697 }
 0x310   : > { %v703_v36 = vsel %vm602_vm3, %v698_v35, 0 }
 0x311   : > { %1525 = vmatpush3.bf16.xpose.msra.mxu1 %v703_v36 }
 0x312   : > { %1536 = vmatprep.subr.bf16.mxu1 %v1661_v9 }
 0x313   : > { %v746_v37 = vpop.permute.xlu1 %745 }
 0x314   : > { %v751_v38 = vsel %vm602_vm3, %v746_v37, 0  ;;  %1521 = vmatmul.mubr.msk.bf16.vlgmr.msra.gmra.mrb[8].mxu0 %vm602_vm3, %v1804_v28 }
 0x315   : > { %1531 = vmatpush3.bf16.xpose.msra.mxu0 %v751_v38  ;;  %1532 = vmatprep.mubr.msk.bf16.mxu0 %vm1662_vm1, %v1661_v9 }
 0x316   : > { %1542 = vmatprep.subr.bf16.mxu0 %v1661_v9 }
 0x318   : > { %1527 = vmatmul.mubr.msk.bf16.vlgmr.msra.gmra.mrb[0].mxu1 %vm602_vm3, %v1807_v29 }
 0x319   : > { %1538 = vmatprep.mubr.msk.bf16.mxu1 %vm1662_vm1, %v1661_v9 }
 0x31c   : > { %1533 = vmatmul.mubr.msk.bf16.vlgmr.msra.gmra.mrb[12].mxu0 %vm602_vm3, %v1810_v30 }
 0x31d   : > { %1544 = vmatprep.mubr.msk.bf16.mxu0 %vm1662_vm1, %v1661_v9 }
 0x37c   : > { %v643_v39 = vpop.f32.mrb[4].mxu0 }
 0x37d   : > { %v1516_v40 = vpop.f32.mrb[5].mxu0  ;;  %v794_v41 = vsel %vm793_vm4, %v643_v39, -inf }
 0x37e   : > { %795 = vmax.xlane.f32.xlu1 %v794_v41  ;;  %v646_v42 = vpop.f32.mrb[6].mxu0 }
 0x37f   : > { %v1517_v43 = vpop.f32.mrb[7].mxu0 }
 0x3e7   : > { %v691_v44 = vpop.f32.mrb[8].mxu0 }
 0x3e8   : > { %v1522_v45 = vpop.f32.mrb[9].mxu0  ;;  %v797_v46 = vsel %vm793_vm4, %v691_v44, -inf }
 0x3e9   : > { %798 = vmax.xlane.f32.xlu0 %v797_v46  ;;  %v694_v47 = vpop.f32.mrb[10].mxu0 }
 0x3ea   : > { %v1523_v48 = vpop.f32.mrb[11].mxu0 }
 0x3eb   : > { %v739_v49 = vpop.f32.mrb[0].mxu1  ;;  %v1617_v48 = vld [vmem:[%s1964_s5] sm:$0xff]  }
 0x3ec   : > { %v1528_v50 = vpop.f32.mrb[1].mxu1  ;;  %v800_v51 = vsel %vm793_vm4, %v739_v49, -inf }
 0x3ed   : > { %v742_v52 = vpop.f32.mrb[2].mxu1  ;;  %801 = vmax.xlane.f32.xlu1 %v800_v51 }
 0x3ee   : > { %v1529_v53 = vpop.f32.mrb[3].mxu1 }
 0x3ef   : > { %v787_v54 = vpop.f32.mrb[12].mxu0 }
 0x3f0   : > { %v1534_v55 = vpop.f32.mrb[13].mxu0  ;;  %v803_v56 = vsel %vm793_vm4, %v787_v54, -inf }
 0x3f1   : > { %804 = vmax.xlane.f32.xlu0 %v803_v56  ;;  %v790_v57 = vpop.f32.mrb[14].mxu0 }
 0x3f2   : > { %v1535_v58 = vpop.f32.mrb[15].mxu0 }
 0x3fe   : > { %842 = vrot.lane.b32.xlu1 %v1798_v26, %s1667_s25 }
 0x40b   : > { %v796_v59 = vpop.xlane.xlu1 %795 }
 0x40c   : > { %v806_v60 = vsub.f32 %v643_v39, %v796_v59 }
 0x40e   : > { %v810_v61 = vmul.f32 1.442695, %v806_v60 }
 0x410   : > { %1631 = vpow2.f32 %v810_v61 }
 0x41a   : > { %v1632_v62 = vpop.eup %1631 }
 0x41b   : > { %v818_v63 = vsel %vm793_vm4, %v1632_v62, 0.0 }
 0x422   : > { %819 = vadd.xlane.f32.xlu1 %v818_v63 }
 0x476   : > { %v799_v0 = vpop.xlane.xlu0 %798 }
 0x477   : > { %v807_v2 = vsub.f32 %v691_v44, %v799_v0 }
 0x479   : > { %v812_v3 = vmul.f32 1.442695, %v807_v2 }
 0x47a   : > { %v802_v6 = vpop.xlane.xlu1 %801 }
 0x47b   : > { %1633 = vpow2.f32 %v812_v3  ;;  %v808_v7 = vsub.f32 %v739_v49, %v802_v6  ;;  %v1618_v49 = vld [vmem:[%s1964_s5 + $0x8] sm:$0xff]  }
 0x47d   : > { %v814_v10 = vmul.f32 1.442695, %v808_v7  ;;  %v1450_v7 = vld [vmem:[%s1965_s6] ss:$0 sm:$0xff] }
 0x47e   : > { %v843_v11 = vpop.permute.xlu1 %842  ;;  %v805_v12 = vpop.xlane.xlu0 %804 }
 0x47f   : > { %1635 = vpow2.f32 %v814_v10  ;;  %v853_v13 = vand.u32 %v851_v8, %v843_v11  ;;  %v809_v14 = vsub.f32 %v787_v54, %v805_v12 }
 0x481   : > { %v816_v15 = vmul.f32 1.442695, %v809_v14  ;;  %1537 = vmatpush3.bf16.msra.mxu1 %v853_v13 }
 0x482   : > { %1548 = vmatprep.subr.bf16.mxu1 %v1661_v9 }
 0x483   : > { %1637 = vpow2.f32 %v816_v15 }
 0x485   : > { %v1634_v16 = vpop.eup %1633 }
 0x486   : > { %v821_v17 = vsel %vm793_vm4, %v1634_v16, 0.0 }
 0x487   : > { %822 = vadd.xlane.f32.xlu0 %v821_v17 }
 0x489   : > { %v1636_v18 = vpop.eup %1635 }
 0x48a   : > { %v824_v19 = vsel %vm793_vm4, %v1636_v18, 0.0 }
 0x48b   : > { %825 = vadd.xlane.f32.xlu1 %v824_v19 }
 0x48d   : > { %v1638_v20 = vpop.eup %1637 }
 0x48e   : > { %v827_v21 = vsel %vm793_vm4, %v1638_v20, 0.0 }
 0x48f   : > { %828 = vadd.xlane.f32.xlu0 %v827_v21  ;;  %v1621_v21 = vld [vmem:[%s1970_s11] sm:$0xff]  }
 0x49c   : > { %943 = vrot.lane.b32.xlu1 %v1807_v29, %s1667_s25 }
 0x4a0   : > { %991 = vrot.lane.b32.xlu1 %v1810_v30, %s1667_s25 }
 0x4a5   : > { %895 = vrot.lane.b32.xlu0 %v1804_v28, %s1667_s25 }
 0x4af   : > { %v820_v22 = vpop.xlane.xlu1 %819 }
 0x4b0   : > { %1639 = vrcp.f32 %v820_v22 }
 0x4ba   : > { %v1640_v23 = vpop.eup %1639 }
 0x4bb   : > { %v831_v24 = vmul.f32 %v1640_v23, %v1632_v62 }
 0x4bd   : > { %v838_v25 = vpack.c.bf16 %v831_v24, %v831_v24 }
 0x4bf   : > { %1539 = vmatmul.mubr.msk.bf16.vlgmr.msra.gmra.mrb[4].mxu1 %vm844_vm7, %v838_v25 }
 0x4c0   : > { %1550 = vmatprep.mubr.msk.bf16.mxu1 %vm1662_vm1, %v1661_v9 }
 0x514   : > { %v823_v26 = vpop.xlane.xlu0 %822 }
 0x515   : > { %1641 = vrcp.f32 %v823_v26  ;;  %v1451_v26 = vld [vmem:[%s1966_s7] ss:$0 sm:$0xff] }
 0x518   : > { %v826_v27 = vpop.xlane.xlu1 %825 }
 0x519   : > { %1643 = vrcp.f32 %v826_v27 }
 0x51c   : > { %v944_v29 = vpop.permute.xlu1 %943  ;;  %v829_v30 = vpop.xlane.xlu0 %828 }
 0x51d   : > { %v949_v31 = vand.u32 %v944_v29, %v851_v8  ;;  %1645 = vrcp.f32 %v829_v30  ;;  %v1452_v29 = vld [vmem:[%s1967_s8] ss:$0 sm:$0xff] }
 0x51f   : > { %v1642_v28 = vpop.eup %1641  ;;  %1549 = vmatpush3.bf16.msra.mxu1 %v949_v31 }
 0x520   : > { %v833_v32 = vmul.f32 %v1642_v28, %v1634_v16  ;;  %v896_v33 = vpop.permute.xlu0 %895  ;;  %1560 = vmatprep.subr.bf16.mxu1 %v1661_v9  ;;  %v992_v35 = vpop.permute.xlu1 %991 }
 0x521   : > { %v901_v34 = vand.u32 %v896_v33, %v851_v8  ;;  %v997_v39 = vand.u32 %v992_v35, %v851_v8  ;;  %v1623_v33 = vld [vmem:[%s1970_s11 + $0x10] sm:$0xff]   ;;  %v1625_v35 = vld [vmem:[%s1970_s11 + $0x20] sm:$0xff]  }
 0x522   : > { %v839_v38 = vpack.c.bf16 %v833_v32, %v833_v32  ;;  %v1622_v32 = vld [vmem:[%s1970_s11 + $0x8] sm:$0xff]  }
 0x523   : > { %v1644_v36 = vpop.eup %1643  ;;  %1543 = vmatpush3.bf16.msra.mxu0 %v901_v34  ;;  %v1624_v34 = vld [vmem:[%s1970_s11 + $0x18] sm:$0xff]  }
 0x524   : > { %v835_v37 = vmul.f32 %v1644_v36, %v1636_v18  ;;  %1554 = vmatprep.subr.bf16.mxu0 %v1661_v9  ;;  %v1626_v36 = vld [vmem:[%s1970_s11 + $0x28] sm:$0xff]  }
 0x526   : > { %1545 = vmatmul.mubr.msk.bf16.vlgmr.msra.gmra.mrb[16].mxu0 %vm844_vm7, %v839_v38  ;;  %v840_v40 = vpack.c.bf16 %v835_v37, %v835_v37  ;;  %v1627_v37 = vld [vmem:[%s1970_s11 + $0x30] sm:$0xff]   ;;  %v1628_v38 = vld [vmem:[%s1970_s11 + $0x38] sm:$0xff]  }
 0x527   : > { %v1646_v41 = vpop.eup %1645  ;;  %1555 = vmatpush3.bf16.msra.mxu0 %v997_v39  ;;  %1556 = vmatprep.mubr.msk.bf16.mxu0 %vm1662_vm1, %v1661_v9  ;;  %v1453_v39 = vld [vmem:[%s1969_s10] ss:$0 sm:$0xff] }
 0x528   : > { %v837_v42 = vmul.f32 %v1646_v41, %v1638_v20  ;;  %1551 = vmatmul.mubr.msk.bf16.vlgmr.msra.gmra.mrb[8].mxu1 %vm844_vm7, %v840_v40  ;;  %1568 = vmatprep.subr.bf16.mxu0 %v1661_v9  ;;  %v1620_v20 = vld [vmem:[%s1968_s9 + $0x8] sm:$0xff]  }
 0x529   : > { %1564 = vmatprep.mubr.msk.bf16.mxu1 %vm1662_vm1, %v1661_v9  ;;  %1561 = vmatpush3.bf16.msra.mxu1 %v1617_v48 }
 0x52a   : > { %v841_v43 = vpack.c.bf16 %v837_v42, %v837_v42  ;;  %1562 = vmatprep.subr.bf16.mxu1 %v1661_v9 }
 0x52d   : > { %1563 = vmatpush3.bf16.msra.mxu1 %v1618_v49 }
 0x52e   : > { %1557 = vmatmul.mubr.msk.bf16.vlgmr.msra.gmra.mrb[20].mxu0 %vm844_vm7, %v841_v43  ;;  %1576 = vmatprep.subr.bf16.mxu1 %v1661_v9 }
 0x52f   : > { %1572 = vmatprep.mubr.msk.bf16.mxu0 %vm1662_vm1, %v1661_v9 }
 0x592   : > { %v889_v44 = vpop.f32.mrb[4].mxu1 }
 0x593   : > { %v1540_v45 = vpop.f32.mrb[5].mxu1 }
 0x594   : > { %v892_v46 = vpop.f32.mrb[6].mxu1 }
 0x595   : > { %v1541_v47 = vpop.f32.mrb[7].mxu1 }
 0x5f9   : > { %v937_v50 = vpop.f32.mrb[16].mxu0 }
 0x5fa   : > { %1040 = vrot.lane.b32.xlu0 %v937_v50, %s1669_s30  ;;  %v1546_v51 = vpop.f32.mrb[17].mxu0 }
 0x5fb   : > { %v940_v52 = vpop.f32.mrb[18].mxu0  ;;  %v985_v53 = vpop.f32.mrb[8].mxu1 }
 0x5fc   : > { %1044 = vrot.lane.b32.xlu1 %v985_v53, %s1670_s16  ;;  %v1547_v54 = vpop.f32.mrb[19].mxu0  ;;  %v1552_v55 = vpop.f32.mrb[9].mxu1  ;;  %s489_s16 = scalar_lea.vmem %s1974_s15, %s1432_s26 }
 0x5fd   : > { %v988_v56 = vpop.f32.mrb[10].mxu1  ;;  %v1457_v54 = vld [vmem:[%s1971_s12] ss:$0 sm:$0xff] }
 0x5fe   : > { %v1553_v57 = vpop.f32.mrb[11].mxu1 }
 0x601   : > { %v1033_v58 = vpop.f32.mrb[20].mxu0 }
 0x602   : > { %1048 = vrot.lane.b32.xlu0 %v1033_v58, %s1671_s17  ;;  %v1558_v59 = vpop.f32.mrb[21].mxu0 }
 0x603   : > { %v1036_v60 = vpop.f32.mrb[22].mxu0 }
 0x604   : > { %v1559_v61 = vpop.f32.mrb[23].mxu0 }
 0x66c   : > { %v1041_v62 = vpop.permute.xlu0 %1040 }
 0x66d   : > { %v1051_v63 = vsel %vm602_vm3, %v889_v44, %v1041_v62 }
 0x66e   : > { %v1045_v0 = vpop.permute.xlu1 %1044 }
 0x66f   : > { %v1053_v2 = vsel %vm1052_vm8, %v1051_v63, %v1045_v0 }
 0x674   : > { %v1049_v3 = vpop.permute.xlu0 %1048 }
 0x675   : > { %v1055_v4 = vsel %vm1054_vm9, %v1053_v2, %v1049_v3 }
 0x676   : > { %v1056_v5 = vpack.c.bf16 %v1055_v4, %v1055_v4 }
 0x678   : > { %1565 = vmatmul.mubr.msk.bf16.vlgmr.msra.gmra.mrb[12].mxu1 %vm548_vm2, %v1056_v5 }
 0x679   : > { %1592 = vmatprep.mubr.msk.bf16.mxu1 %vm1662_vm1, %v1661_v9  ;;  %1577 = vmatpush3.bf16.msra.mxu1 %v1621_v21 }
 0x67a   : > { %1578 = vmatprep.subr.bf16.mxu1 %v1661_v9 }
 0x67d   : > { %1579 = vmatpush3.bf16.msra.mxu1 %v1622_v32 }
 0x67e   : > { %1580 = vmatprep.subr.bf16.mxu1 %v1661_v9 }
 0x681   : > { %1581 = vmatpush3.bf16.msra.mxu1 %v1623_v33 }
 0x682   : > { %1582 = vmatprep.subr.bf16.mxu1 %v1661_v9 }
 0x685   : > { %1583 = vmatpush3.bf16.msra.mxu1 %v1624_v34 }
 0x686   : > { %1584 = vmatprep.subr.bf16.mxu1 %v1661_v9 }
 0x689   : > { %1585 = vmatpush3.bf16.msra.mxu1 %v1625_v35 }
 0x68a   : > { %1586 = vmatprep.subr.bf16.mxu1 %v1661_v9 }
 0x68d   : > { %1587 = vmatpush3.bf16.msra.mxu1 %v1626_v36 }
 0x68e   : > { %1588 = vmatprep.subr.bf16.mxu1 %v1661_v9 }
 0x691   : > { %1589 = vmatpush3.bf16.msra.mxu1 %v1627_v37 }
 0x692   : > { %1590 = vmatprep.subr.bf16.mxu1 %v1661_v9 }
 0x695   : > { %1591 = vmatpush3.bf16.msra.mxu1 %v1628_v38 }
 0x74b   : > { %v1110_v6 = vpop.f32.mrb[12].mxu1 }
 0x74c   : > { %v1116_v8 = vadd.f32 %v1110_v6, %v1766_v1  ;;  %v1566_v10 = vpop.f32.mrb[13].mxu1  ;;  %v1619_v1 = vld [vmem:[%s1968_s9] sm:$0xff]  }
 0x74d   : > { %v1113_v11 = vpop.f32.mrb[14].mxu1  ;;  %1569 = vmatpush3.bf16.msra.mxu0 %v1619_v1 }
 0x74e   : > { %v1885_v12 = vadd.f32 %v1450_v7, %v1116_v8  ;;  %v1567_v13 = vpop.f32.mrb[15].mxu1  ;;  %1570 = vmatprep.subr.bf16.mxu0 %v1661_v9  ;;  %v1466_v8 = vld [vmem:[%s1972_s13] ss:$0 sm:$0xff] }
 0x74f   : > { %v1467_v11 = vld [vmem:[%s1973_s14] ss:$0 sm:$0xff] }
 0x750   : > { %v1127_v14 = vsel %vm495_vm0, %v1885_v12, 0.0 }
 0x751   : > { %1128 = vadd.xlane.f32.xlu1 %v1127_v14  ;;  %1571 = vmatpush3.bf16.msra.mxu0 %v1620_v20 }
 0x7de   : > { %v1129_v15 = vpop.xlane.xlu1 %1128 }
 0x7df   : > { %v1130_v16 = vmul.f32 0.03125, %v1129_v15 }
 0x7e1   : > { %v1131_v17 = vsub.f32 %v1885_v12, %v1130_v16 }
 0x7e3   : > { %v1132_v18 = vmul.f32 %v1131_v17, %v1131_v17 }
 0x7e5   : > { %v1133_v19 = vsel %vm495_vm0, %v1132_v18, 0.0 }
 0x7e6   : > { %1134 = vadd.xlane.f32.xlu0 %v1133_v19 }
 0x873   : > { %v1135_v22 = vpop.xlane.xlu0 %1134 }
 0x874   : > { %v1136_v23 = vmul.f32 0.03125, %v1135_v22 }
 0x876   : > { %v1137_v24 = vadd.f32 1e-05, %v1136_v23 }
 0x878   : > { %1647 = vrsqrt.f32 %v1137_v24 }
 0x882   : > { %v1648_v25 = vpop.eup %1647 }
 0x883   : > { %v1139_v27 = vmul.f32 %v1648_v25, %v1131_v17 }
 0x885   : > { %v1146_v30 = vmul.f32 %v1451_v26, %v1139_v27 }
 0x887   : > { %v1153_v31 = vadd.f32 %v1452_v29, %v1146_v30 }
 0x889   : > { %v1154_v28 = vpack.c.bf16 %v1153_v31, %v1153_v31 }
 0x88b   : > { %1573 = vmatmul.mubr.msk.bf16.vlgmr.msra.gmra.mrb[24].mxu0 %vm548_vm2, %v1154_v28 }
 0x95e   : > { %v1215_v40 = vpop.f32.mrb[24].mxu0 }
 0x95f   : > { %v1216_v41 = vadd.f32 %v1453_v39, %v1215_v40  ;;  %v1574_v42 = vpop.f32.mrb[25].mxu0 }
 0x960   : > { %v1218_v43 = vpop.f32.mrb[26].mxu0 }
 0x961   : > { %v1222_v44 = vmul.f32 0.044715, %v1216_v41  ;;  %v1575_v45 = vpop.f32.mrb[27].mxu0  ;;  %v1221_v51 = vmul.f32 0.5, %v1216_v41 }
 0x963   : > { %v1223_v46 = vmul.f32 %v1222_v44, %v1216_v41 }
 0x965   : > { %v1224_v47 = vmul.f32 %v1223_v46, %v1216_v41 }
 0x967   : > { %v1225_v48 = vadd.f32 %v1224_v47, %v1216_v41 }
 0x969   : > { %v1226_v49 = vmul.f32 0.7978846, %v1225_v48 }
 0x96b   : > { %1649 = vtanh.f32 %v1226_v49 }
 0x975   : > { %v1650_v50 = vpop.eup %1649 }
 0x976   : > { %v1228_v52 = vadd.f32 1.0, %v1650_v50 }
 0x978   : > { %v1229_v9 = vmul.f32 %v1228_v52, %v1221_v51 }
 0x97a   : > { %v1230_v53 = vpack.c.bf16 %v1229_v9, %v1229_v9 }
 0x97c   : > { %1593 = vmatmul.mubr.bf16.vlgmr.msra.gmra.mrb[16].mxu1 %v1230_v53 }
 0xa4f   : > { %v1336_v55 = vpop.f32.mrb[16].mxu1 }
 0xa50   : > { %v1337_v56 = vadd.f32 %v1457_v54, %v1336_v55  ;;  %v1594_v57 = vpop.f32.mrb[17].mxu1 }
 0xa51   : > { %v1339_v58 = vpop.f32.mrb[18].mxu1 }
 0xa52   : > { %v1595_v59 = vpop.f32.mrb[19].mxu1  ;;  %v1342_v60 = vadd.f32 %v1337_v56, %v1885_v12 }
 0xa54   : > { %v1345_v61 = vsel %vm495_vm0, %v1342_v60, 0.0 }
 0xa55   : > { %1346 = vadd.xlane.f32.xlu0 %v1345_v61 }
 0xae2   : > { %v1347_v62 = vpop.xlane.xlu0 %1346 }
 0xae3   : > { %v1348_v63 = vmul.f32 0.03125, %v1347_v62 }
 0xae5   : > { %v1349_v0 = vsub.f32 %v1342_v60, %v1348_v63 }
 0xae7   : > { %v1350_v2 = vmul.f32 %v1349_v0, %v1349_v0 }
 0xae9   : > { %v1351_v3 = vsel %vm495_vm0, %v1350_v2, 0.0 }
 0xaea   : > { %1352 = vadd.xlane.f32.xlu1 %v1351_v3 }
 0xb77   : > { %v1353_v4 = vpop.xlane.xlu1 %1352 }
 0xb78   : > { %v1354_v5 = vmul.f32 0.03125, %v1353_v4 }
 0xb7a   : > { %v1355_v6 = vadd.f32 1e-05, %v1354_v5 }
 0xb7c   : > { %1651 = vrsqrt.f32 %v1355_v6 }
 0xb86   : > { %v1652_v7 = vpop.eup %1651 }
 0xb87   : > { %v1357_v10 = vmul.f32 %v1652_v7, %v1349_v0 }
 0xb89   : > { %v1364_v12 = vmul.f32 %v1466_v8, %v1357_v10 }
 0xb8b   : > { %v1371_v13 = vadd.f32 %v1467_v11, %v1364_v12 }
 0xb8d   : > { %1372 = vst.msk [vmem:[%s489_s16] sm:$0x1f] %vm495_vm0, %v1371_v13 }
 0xb8e PF: > { %s25_s18 = sadd.s32 1, %s1659_s18  }
 0xb8f   : > { %p22_p4 = scmp.ge.s32.totalorder %s25_s18, 4  }
 0xb91   :  { %24 = sbr.rel (!%p22_p4) target bundleno = 1 (0x1), region = 110 }

</bundles_post_ra>
